<compile_context>
chip_gen: v5e
topology: v5e:2x2
jax: 0.10.0
libtpu: 0.0.40
codegen_flags: <defaults>
</compile_context>

<pallas_src>
import functools

import jax
import jax.numpy as jnp
from jax.experimental import pallas as pl
from jax.experimental.pallas import tpu as pltpu

# MXU-input dtype.  Accumulation, softmax, LayerNorm, residuals stay float32.
# Set to jnp.float32 for bit-closer-to-torch numerics.
COMPUTE_DTYPE = jnp.bfloat16
_VMEM_LIMIT = 32 * 1024 * 1024  # explicit scoped-VMEM budget; fits v5e/v6e/v7x


def _round_up(x, m):
    return ((x + m - 1) // m) * m


# ----------------------------------------------------------------------------
# Kernel A: fused attention layer (per batch element)
#   out = LayerNorm( xq + (MHA(xq, xkv, xkv, mask) @ Wo + bo) )
# ----------------------------------------------------------------------------
def _attn_block_kernel(xq_ref, xkv_ref, m_ref,
                       wq_ref, bq_ref, wk_ref, bk_ref, wv_ref, bv_ref,
                       wo_ref, bo_ref, g_ref, b_ref, o_ref,
                       *, heads, inv_scale):
    f32 = jnp.float32
    cdt = wq_ref.dtype                       # matmul-input dtype (bf16 or f32)

    xq = xq_ref[0]                           # (Lq, E) f32 -- also the residual
    xkv = xkv_ref[0]                         # (Lk, E) f32
    mask = m_ref[0].astype(jnp.int32)        # (Lq, Lk)

    xq_c = xq.astype(cdt)
    xkv_c = xkv.astype(cdt)

    # Fused Q/K/V projections: block-diagonal (E,E) weights -> single lane-dense matmul each.
    q = jnp.dot(xq_c, wq_ref[...], preferred_element_type=f32) + bq_ref[...]
    k = jnp.dot(xkv_c, wk_ref[...], preferred_element_type=f32) + bk_ref[...]
    v = jnp.dot(xkv_c, wv_ref[...], preferred_element_type=f32) + bv_ref[...]

    dh = q.shape[-1] // heads
    neg = jnp.float32(-1e20)
    ctx_parts = []
    for h in range(heads):                   # static unroll over heads
        sl = slice(h * dh, (h + 1) * dh)
        qh = q[:, sl].astype(cdt)            # (Lq, dh)
        kh = k[:, sl].astype(cdt)            # (Lk, dh)
        vh = v[:, sl].astype(cdt)            # (Lk, dh)
        # scores = qh @ kh^T  (contract last dims; no explicit transpose needed)
        s = jax.lax.dot_general(qh, kh, (((1,), (1,)), ((), ())),
                                preferred_element_type=f32)       # (Lq, Lk)
        # masked_fill(mask==0, -1e20) then divide by sqrt(embed_size) -- reference order.
        s = jnp.where(mask == 0, neg, s) * inv_scale
        s = s - jnp.max(s, axis=-1, keepdims=True)
        p = jnp.exp(s)                                            # f32 softmax
        p = p * pl.reciprocal(jnp.sum(p, axis=-1, keepdims=True), approx=True)
        ctx_parts.append(jnp.dot(p.astype(cdt), vh, preferred_element_type=f32))
    ctx = jnp.concatenate(ctx_parts, axis=-1)                     # (Lq, E) lane-dense

    out = jnp.dot(ctx.astype(cdt), wo_ref[...], preferred_element_type=f32) + bo_ref[...]

    # residual + LayerNorm (float32) fused in the epilogue
    z = xq + out
    mean = jnp.mean(z, axis=-1, keepdims=True)
    var = jnp.mean((z - mean) ** 2, axis=-1, keepdims=True)
    zn = (z - mean) * jax.lax.rsqrt(var + 1e-5)
    o_ref[0] = zn * g_ref[...] + b_ref[...]


def attention_ln_fused(xq, xkv, mask3, ap, ln_g, ln_b, embed_size, heads):
    """xq: (N, Lq, E), xkv: (N, Lk, E), mask3: (N, Lq, Lk) int8."""
    N, Lq, E = xq.shape
    Lk = xkv.shape[1]
    # Shared-per-head (Dh,Dh) projection == block-diagonal (E,E) weight = kron(I_H, W).
    eye = jnp.eye(heads, dtype=ap["wq"].dtype)
    wq_bd = jnp.kron(eye, ap["wq"]).astype(COMPUTE_DTYPE)
    wk_bd = jnp.kron(eye, ap["wk"]).astype(COMPUTE_DTYPE)
    wv_bd = jnp.kron(eye, ap["wv"]).astype(COMPUTE_DTYPE)
    bq = jnp.tile(ap["bq"], heads).reshape(1, E)
    bk = jnp.tile(ap["bk"], heads).reshape(1, E)
    bv = jnp.tile(ap["bv"], heads).reshape(1, E)
    wo = ap["wo"].astype(COMPUTE_DTYPE)
    bo = ap["bo"].reshape(1, E)
    inv_scale = 1.0 / (float(embed_size) ** 0.5)

    kernel = functools.partial(_attn_block_kernel, heads=heads, inv_scale=inv_scale)

    def mat():
        return pl.BlockSpec((E, E), lambda n: (0, 0))

    def vec():
        return pl.BlockSpec((1, E), lambda n: (0, 0))

    return pl.pallas_call(
        kernel,
        out_shape=jax.ShapeDtypeStruct((N, Lq, E), jnp.float32),
        grid=(N,),
        in_specs=[
            pl.BlockSpec((1, Lq, E), lambda n: (n, 0, 0)),   # xq
            pl.BlockSpec((1, Lk, E), lambda n: (n, 0, 0)),   # xkv
            pl.BlockSpec((1, Lq, Lk), lambda n: (n, 0, 0)),  # mask (int8)
            mat(), vec(),                                    # wq, bq
            mat(), vec(),                                    # wk, bk
            mat(), vec(),                                    # wv, bv
            mat(), vec(),                                    # wo, bo
            vec(), vec(),                                    # ln gamma, beta
        ],
        out_specs=pl.BlockSpec((1, Lq, E), lambda n: (n, 0, 0)),
        compiler_params=pltpu.CompilerParams(
            dimension_semantics=("parallel",),
            vmem_limit_bytes=_VMEM_LIMIT),
    )(xq, xkv, mask3, wq_bd, bq, wk_bd, bk, wv_bd, bv, wo, bo,
      ln_g.reshape(1, E), ln_b.reshape(1, E))


# ----------------------------------------------------------------------------
# Kernel B: fused FFN + residual + LayerNorm, row-tiled
#   out = LayerNorm( x + (ReLU(x@W1+b1) @ W2 + b2) )
# ----------------------------------------------------------------------------
def _ffn_ln_kernel(x_ref, w1_ref, b1_ref, w2_ref, b2_ref, g_ref, b_ref, o_ref):
    f32 = jnp.float32
    cdt = w1_ref.dtype
    x = x_ref[...]                                           # (tm, E) f32 residual
    h = jnp.dot(x.astype(cdt), w1_ref[...], preferred_element_type=f32) + b1_ref[...]
    h = jnp.maximum(h, 0.0)                                  # ReLU in f32 (VPU)
    y = jnp.dot(h.astype(cdt), w2_ref[...], preferred_element_type=f32) + b2_ref[...]
    z = x + y
    mean = jnp.mean(z, axis=-1, keepdims=True)
    var = jnp.mean((z - mean) ** 2, axis=-1, keepdims=True)
    zn = (z - mean) * jax.lax.rsqrt(var + 1e-5)
    o_ref[...] = zn * g_ref[...] + b_ref[...]


def ffn_ln_fused(x, w1, b1, w2, b2, ln_g, ln_b, *, tm=256):
    Nb, L, E = x.shape
    Hd = w1.shape[1]
    M = Nb * L
    x2 = x.reshape(M, E)
    tm = min(tm, _round_up(M, 8))
    Mp = _round_up(M, tm)
    if Mp != M:
        x2 = jnp.zeros((Mp, E), x2.dtype).at[:M].set(x2)
    out = pl.pallas_call(
        _ffn_ln_kernel,
        out_shape=jax.ShapeDtypeStruct((Mp, E), jnp.float32),
        grid=(Mp // tm,),
        in_specs=[
            pl.BlockSpec((tm, E), lambda i: (i, 0)),
            pl.BlockSpec((E, Hd), lambda i: (0, 0)),
            pl.BlockSpec((1, Hd), lambda i: (0, 0)),
            pl.BlockSpec((Hd, E), lambda i: (0, 0)),
            pl.BlockSpec((1, E), lambda i: (0, 0)),
            pl.BlockSpec((1, E), lambda i: (0, 0)),
            pl.BlockSpec((1, E), lambda i: (0, 0)),
        ],
        out_specs=pl.BlockSpec((tm, E), lambda i: (i, 0)),
        compiler_params=pltpu.CompilerParams(
            dimension_semantics=("parallel",),
            vmem_limit_bytes=_VMEM_LIMIT),
    )(x2, w1.astype(COMPUTE_DTYPE), b1.reshape(1, Hd),
      w2.astype(COMPUTE_DTYPE), b2.reshape(1, E),
      ln_g.reshape(1, E), ln_b.reshape(1, E))
    return out[:M].reshape(Nb, L, E)


# ----------------------------------------------------------------------------
# Kernel C: tiled matmul + bias (K-accumulating grid) for the vocab projection
# ----------------------------------------------------------------------------
def _matmul_bias_kernel(x_ref, w_ref, b_ref, o_ref, acc_ref):
    @pl.when(pl.program_id(2) == 0)
    def _():
        acc_ref[...] = jnp.zeros_like(acc_ref)

    acc_ref[...] += jnp.dot(x_ref[...], w_ref[...], preferred_element_type=jnp.float32)

    @pl.when(pl.program_id(2) == pl.num_programs(2) - 1)
    def _():
        o_ref[...] = (acc_ref[...] + b_ref[...]).astype(o_ref.dtype)


def linear_tiled(x2, w, b, *, tm=256, tn=256, tk=512):
    """(M,K) @ (K,N) + b, bf16 MXU inputs, f32 accumulator, padded to tile multiples."""
    M, K = x2.shape
    N = w.shape[1]
    tm = min(tm, _round_up(M, 8))
    tn = min(tn, _round_up(N, 128))
    tk = min(tk, _round_up(K, 128))
    Mp, Kp, Np = _round_up(M, tm), _round_up(K, tk), _round_up(N, tn)

    xp = jnp.zeros((Mp, Kp), COMPUTE_DTYPE).at[:M, :K].set(x2.astype(COMPUTE_DTYPE))
    wp = jnp.zeros((Kp, Np), COMPUTE_DTYPE).at[:K, :N].set(w.astype(COMPUTE_DTYPE))
    bp = jnp.zeros((1, Np), jnp.float32).at[:, :N].set(b.reshape(1, N).astype(jnp.float32))

    out = pl.pallas_call(
        _matmul_bias_kernel,
        out_shape=jax.ShapeDtypeStruct((Mp, Np), jnp.float32),
        grid=(Mp // tm, Np // tn, Kp // tk),
        in_specs=[
            pl.BlockSpec((tm, tk), lambda i, j, k: (i, k)),
            pl.BlockSpec((tk, tn), lambda i, j, k: (k, j)),
            pl.BlockSpec((1, tn), lambda i, j, k: (0, j)),
        ],
        out_specs=pl.BlockSpec((tm, tn), lambda i, j, k: (i, j)),
        scratch_shapes=[pltpu.VMEM((tm, tn), jnp.float32)],
        compiler_params=pltpu.CompilerParams(
            dimension_semantics=("parallel", "parallel", "arbitrary"),
            vmem_limit_bytes=_VMEM_LIMIT),
    )(xp, wp, bp)
    return out[:M, :N]


# ----------------------------------------------------------------------------
# Model forward (glue around the kernels)
# ----------------------------------------------------------------------------
def _prep_mask(mask4, Lq, Lk):
    """(N,1,q_or_1,Lk) bool -> (N, Lq, Lk) int8."""
    n = mask4.shape[0]
    return jnp.broadcast_to(mask4[:, 0], (n, Lq, Lk)).astype(jnp.int8)


def transformer_block_fwd(p, query, kv, mask4, embed_size, heads):
    Lq = query.shape[1]
    Lk = kv.shape[1]
    mask3 = _prep_mask(mask4, Lq, Lk)
    x = attention_ln_fused(query, kv, mask3, p["attn"], p["ln1_g"], p["ln1_b"],
                           embed_size, heads)
    return ffn_ln_fused(x, p["fc1_w"], p["fc1_b"], p["fc2_w"], p["fc2_b"],
                        p["ln2_g"], p["ln2_b"])


def decoder_block_fwd(p, x, enc_kv, src_mask4, trg_mask4, embed_size, heads):
    T = x.shape[1]
    trg_mask3 = _prep_mask(trg_mask4, T, T)
    h = attention_ln_fused(x, x, trg_mask3, p["attn"], p["ln_g"], p["ln_b"],
                           embed_size, heads)
    return transformer_block_fwd(p["tblock"], h, enc_kv, src_mask4, embed_size, heads)


def encoder_fwd(p, x_tok, mask4, embed_size, heads):
    n, t = x_tok.shape
    scale = float(embed_size) ** 0.5
    we = jnp.take(p["word_emb"], x_tok, axis=0) * scale
    pe = jnp.take(p["pos_emb"], jnp.arange(t), axis=0)[None, :, :] * scale
    out = we + pe
    for blk in p["blocks"]:
        out = transformer_block_fwd(blk, out, out, mask4, embed_size, heads)
    return out


def decoder_fwd(p, x_tok, encoder_kv, src_mask4, trg_mask4, embed_size, heads):
    n, t = x_tok.shape
    scale = float(embed_size) ** 0.5
    we = jnp.take(p["word_emb"], x_tok, axis=0) * scale
    pe = jnp.take(p["pos_emb"], jnp.arange(t), axis=0)[None, :, :] * scale
    out = we + pe
    for blk in p["blocks"]:
        out = decoder_block_fwd(blk, out, encoder_kv, src_mask4, trg_mask4,
                                embed_size, heads)
    Nb, L, E = out.shape
    out = linear_tiled(out.reshape(-1, E), p["fc_w"], p["fc_b"])
    return out.reshape(Nb, L, -1)


def make_src_mask(src, pad_idx):
    return (src != pad_idx)[:, None, None, :]             # (N, 1, 1, Ls) bool


def make_trg_mask(trg, pad_idx):
    N, T = trg.shape
    pad = (trg != pad_idx)[:, None, None, :]              # (N, 1, 1, T)
    tri = jnp.tril(jnp.ones((T, T), dtype=bool))[None, None, :, :]
    return pad & tri                                      # (N, 1, T, T)


def transformer_fwd(params, src, trg, src_pad_idx, trg_pad_idx, embed_size, heads):
    src_mask = make_src_mask(src, src_pad_idx)
    trg_mask = make_trg_mask(trg, trg_pad_idx)
    enc_kv = encoder_fwd(params["encoder"], src, src_mask, embed_size, heads)
    return decoder_fwd(params["decoder"], trg, enc_kv, src_mask, trg_mask,
                       embed_size, heads)


# ----------------------------------------------------------------------------
# Deterministic parameter init (weights stored as (in, out), i.e. torch W^T)
# ----------------------------------------------------------------------------
def _nrm(key, shape, scale=0.02):
    return (scale * jax.random.normal(key, shape)).astype(jnp.float32)


def init_self_attention(key, embed_size, heads):
    dh = embed_size // heads
    ks = jax.random.split(key, 8)
    return {
        "wq": _nrm(ks[0], (dh, dh)), "bq": _nrm(ks[1], (dh,)),
        "wk": _nrm(ks[2], (dh, dh)), "bk": _nrm(ks[3], (dh,)),
        "wv": _nrm(ks[4], (dh, dh)), "bv": _nrm(ks[5], (dh,)),
        "wo": _nrm(ks[6], (embed_size, embed_size)), "bo": _nrm(ks[7], (embed_size,)),
    }


def init_transformer_block(key, embed_size, heads, fexp):
    ks = jax.random.split(key, 5)
    hid = embed_size * fexp
    return {
        "attn": init_self_attention(ks[0], embed_size, heads),
        "ln1_g": jnp.ones((embed_size,), jnp.float32),
        "ln1_b": jnp.zeros((embed_size,), jnp.float32),
        "ln2_g": jnp.ones((embed_size,), jnp.float32),
        "ln2_b": jnp.zeros((embed_size,), jnp.float32),
        "fc1_w": _nrm(ks[1], (embed_size, hid)), "fc1_b": _nrm(ks[2], (hid,)),
        "fc2_w": _nrm(ks[3], (hid, embed_size)), "fc2_b": _nrm(ks[4], (embed_size,)),
    }


def init_decoder_block(key, embed_size, heads, fexp):
    ks = jax.random.split(key, 2)
    return {
        "attn": init_self_attention(ks[0], embed_size, heads),
        "ln_g": jnp.ones((embed_size,), jnp.float32),
        "ln_b": jnp.zeros((embed_size,), jnp.float32),
        "tblock": init_transformer_block(ks[1], embed_size, heads, fexp),
    }


def init_transformer(key, src_vocab, trg_vocab, embed_size, n_layers, heads,
                     fexp, max_len):
    ks = jax.random.split(key, 8 + 2 * n_layers)
    enc = {
        "word_emb": _nrm(ks[0], (src_vocab, embed_size)),
        "pos_emb": _nrm(ks[1], (max_len, embed_size)),
        "blocks": [init_transformer_block(ks[4 + i], embed_size, heads, fexp)
                   for i in range(n_layers)],
    }
    dec = {
        "word_emb": _nrm(ks[2], (trg_vocab, embed_size)),
        "pos_emb": _nrm(ks[3], (max_len, embed_size)),
        "blocks": [init_decoder_block(ks[4 + n_layers + i], embed_size, heads, fexp)
                   for i in range(n_layers)],
        "fc_w": _nrm(ks[4 + 2 * n_layers], (embed_size, trg_vocab)),
        "fc_b": _nrm(ks[5 + 2 * n_layers], (trg_vocab,)),
    }
    return {"encoder": enc, "decoder": dec}


# ----------------------------------------------------------------------------
# Demo
# ----------------------------------------------------------------------------
if __name__ == "__main__":
    SRC_VOCAB, TRG_VOCAB = 50, 60
    SRC_PAD, TRG_PAD = 0, 0
    EMBED, HEADS, LAYERS, FEXP, MAX_LEN = 32, 4, 2, 4, 16
    N, SRC_LEN, TRG_LEN = 2, 8, 8

    root = jax.random.PRNGKey(0)
    kp, ks, kt = jax.random.split(root, 3)
    params = init_transformer(kp, SRC_VOCAB, TRG_VOCAB, EMBED, LAYERS, HEADS,
                              FEXP, MAX_LEN)

    src = jax.random.randint(ks, (N, SRC_LEN), 0, SRC_VOCAB, dtype=jnp.int32)
    trg = jax.random.randint(kt, (N, TRG_LEN), 0, TRG_VOCAB, dtype=jnp.int32)

    fwd = jax.jit(functools.partial(transformer_fwd,
                                    src_pad_idx=SRC_PAD, trg_pad_idx=TRG_PAD,
                                    embed_size=EMBED, heads=HEADS))
    out = fwd(params, src, trg)
    jax.block_until_ready(out)
    assert out.shape == (N, TRG_LEN, TRG_VOCAB)
    assert bool(jnp.all(jnp.isfinite(out)))
    print("KERNEL_OK")
</pallas_src>

<mosaic_0001>
module attributes {stable_mosaic.version = 11 : i64} {
  func.func @_ffn_ln_kernel(%arg0: i32, %arg1: memref<16x32xf32, #tpu.memory_space<vmem>>, %arg2: memref<32x128xbf16, #tpu.memory_space<vmem>>, %arg3: memref<1x128xf32, #tpu.memory_space<vmem>>, %arg4: memref<128x32xbf16, #tpu.memory_space<vmem>>, %arg5: memref<1x32xf32, #tpu.memory_space<vmem>>, %arg6: memref<1x32xf32, #tpu.memory_space<vmem>>, %arg7: memref<1x32xf32, #tpu.memory_space<vmem>>, %arg8: memref<16x32xf32, #tpu.memory_space<vmem>>) attributes {dimension_semantics = [#tpu.dimension_semantics<parallel>], iteration_bounds = array<i64: 1>, scalar_prefetch = 0 : i64, scratch_operands = 0 : i64, tpu.core_type = #tpu.core_type<tc>, window_params = [{transform_indices = @transform_0, window_bounds = array<i64: 16, 32>}, {pipeline_mode = #tpu.pipeline_mode<synchronous>, transform_indices = @transform_1, window_bounds = array<i64: 32, 128>}, {pipeline_mode = #tpu.pipeline_mode<synchronous>, transform_indices = @transform_2, window_bounds = array<i64: 1, 128>}, {pipeline_mode = #tpu.pipeline_mode<synchronous>, transform_indices = @transform_3, window_bounds = array<i64: 128, 32>}, {pipeline_mode = #tpu.pipeline_mode<synchronous>, transform_indices = @transform_4, window_bounds = array<i64: 1, 32>}, {pipeline_mode = #tpu.pipeline_mode<synchronous>, transform_indices = @transform_5, window_bounds = array<i64: 1, 32>}, {pipeline_mode = #tpu.pipeline_mode<synchronous>, transform_indices = @transform_6, window_bounds = array<i64: 1, 32>}, {transform_indices = @transform_7, window_bounds = array<i64: 16, 32>}]} {
    %c0 = arith.constant 0 : index
    %c0_0 = arith.constant 0 : index
    %0 = vector.load %arg1[%c0, %c0_0] : memref<16x32xf32, #tpu.memory_space<vmem>>, vector<16x32xf32>
    %1 = arith.truncf %0 : vector<16x32xf32> to vector<16x32xbf16>
    %c0_1 = arith.constant 0 : index
    %c0_2 = arith.constant 0 : index
    %2 = vector.load %arg2[%c0_1, %c0_2] : memref<32x128xbf16, #tpu.memory_space<vmem>>, vector<32x128xbf16>
    %cst = arith.constant dense<0.000000e+00> : vector<16x128xf32>
    %3 = tpu.matmul %1, %2, %cst {dimension_numbers = #tpu.dot_dimension_numbers<[1], [0], [0], [1], [0, 0, 1, 1], [], []>} : vector<16x32xbf16>, vector<32x128xbf16>, vector<16x128xf32> -> vector<16x128xf32>
    %c0_3 = arith.constant 0 : index
    %c0_4 = arith.constant 0 : index
    %4 = vector.load %arg3[%c0_3, %c0_4] : memref<1x128xf32, #tpu.memory_space<vmem>>, vector<1x128xf32>
    %5 = vector.broadcast %4 : vector<1x128xf32> to vector<16x128xf32>
    %6 = arith.addf %3, %5 : vector<16x128xf32>
    %cst_5 = arith.constant 0.000000e+00 : f32
    %7 = vector.broadcast %cst_5 : f32 to vector<16x128xf32>
    %8 = arith.maximumf %6, %7 : vector<16x128xf32>
    %9 = arith.truncf %8 : vector<16x128xf32> to vector<16x128xbf16>
    %c0_6 = arith.constant 0 : index
    %c0_7 = arith.constant 0 : index
    %10 = vector.load %arg4[%c0_6, %c0_7] : memref<128x32xbf16, #tpu.memory_space<vmem>>, vector<128x32xbf16>
    %cst_8 = arith.constant dense<0.000000e+00> : vector<16x32xf32>
    %11 = tpu.matmul %9, %10, %cst_8 {dimension_numbers = #tpu.dot_dimension_numbers<[1], [0], [0], [1], [0, 0, 1, 1], [], []>} : vector<16x128xbf16>, vector<128x32xbf16>, vector<16x32xf32> -> vector<16x32xf32>
    %c0_9 = arith.constant 0 : index
    %c0_10 = arith.constant 0 : index
    %12 = vector.load %arg5[%c0_9, %c0_10] : memref<1x32xf32, #tpu.memory_space<vmem>>, vector<1x32xf32>
    %13 = vector.broadcast %12 : vector<1x32xf32> to vector<16x32xf32>
    %14 = arith.addf %11, %13 : vector<16x32xf32>
    %15 = arith.addf %0, %14 : vector<16x32xf32>
    %cst_11 = arith.constant dense<0.000000e+00> : vector<16xf32>
    %16 = vector.multi_reduction <add>, %15, %cst_11 [1] : vector<16x32xf32> to vector<16xf32>
    %17 = vector.shape_cast %16 : vector<16xf32> to vector<16x1xf32>
    %cst_12 = arith.constant 3.200000e+01 : f32
    %18 = vector.broadcast %cst_12 : f32 to vector<16x1xf32>
    %19 = arith.divf %17, %18 : vector<16x1xf32>
    %20 = vector.broadcast %19 : vector<16x1xf32> to vector<16x32xf32>
    %21 = arith.subf %15, %20 : vector<16x32xf32>
    %22 = arith.mulf %21, %21 : vector<16x32xf32>
    %cst_13 = arith.constant dense<0.000000e+00> : vector<16xf32>
    %23 = vector.multi_reduction <add>, %22, %cst_13 [1] : vector<16x32xf32> to vector<16xf32>
    %24 = vector.shape_cast %23 : vector<16xf32> to vector<16x1xf32>
    %cst_14 = arith.constant 3.200000e+01 : f32
    %25 = vector.broadcast %cst_14 : f32 to vector<16x1xf32>
    %26 = arith.divf %24, %25 : vector<16x1xf32>
    %27 = vector.broadcast %19 : vector<16x1xf32> to vector<16x32xf32>
    %28 = arith.subf %15, %27 : vector<16x32xf32>
    %cst_15 = arith.constant 9.99999974E-6 : f32
    %29 = vector.broadcast %cst_15 : f32 to vector<16x1xf32>
    %30 = arith.addf %26, %29 : vector<16x1xf32>
    %31 = math.rsqrt %30 : vector<16x1xf32>
    %32 = vector.broadcast %31 : vector<16x1xf32> to vector<16x32xf32>
    %33 = arith.mulf %28, %32 : vector<16x32xf32>
    %c0_16 = arith.constant 0 : index
    %c0_17 = arith.constant 0 : index
    %34 = vector.load %arg6[%c0_16, %c0_17] : memref<1x32xf32, #tpu.memory_space<vmem>>, vector<1x32xf32>
    %35 = vector.broadcast %34 : vector<1x32xf32> to vector<16x32xf32>
    %36 = arith.mulf %33, %35 : vector<16x32xf32>
    %c0_18 = arith.constant 0 : index
    %c0_19 = arith.constant 0 : index
    %37 = vector.load %arg7[%c0_18, %c0_19] : memref<1x32xf32, #tpu.memory_space<vmem>>, vector<1x32xf32>
    %38 = vector.broadcast %37 : vector<1x32xf32> to vector<16x32xf32>
    %39 = arith.addf %36, %38 : vector<16x32xf32>
    %c0_20 = arith.constant 0 : index
    %c0_21 = arith.constant 0 : index
    %40 = vector.load %arg8[%c0_20, %c0_21] : memref<16x32xf32, #tpu.memory_space<vmem>>, vector<16x32xf32>
    tpu.vector_store %arg8[%c0_20, %c0_21], %39 {strides = array<i32>} : memref<16x32xf32, #tpu.memory_space<vmem>>, vector<16x32xf32>,
    return
  }
  func.func @transform_0(%arg0: i32) -> (i32, i32) {
    %c0_i32 = arith.constant 0 : i32
    %c0_i32_0 = arith.constant 0 : i32
    return %arg0, %c0_i32 : i32, i32
  }
  func.func @transform_1(%arg0: i32) -> (i32, i32) {
    %c0_i32 = arith.constant 0 : i32
    %c0_i32_0 = arith.constant 0 : i32
    %c0_i32_1 = arith.constant 0 : i32
    return %c0_i32, %c0_i32_0 : i32, i32
  }
  func.func @transform_2(%arg0: i32) -> (i32, i32) {
    %c0_i32 = arith.constant 0 : i32
    %c0_i32_0 = arith.constant 0 : i32
    %c0_i32_1 = arith.constant 0 : i32
    return %c0_i32, %c0_i32_0 : i32, i32
  }
  func.func @transform_3(%arg0: i32) -> (i32, i32) {
    %c0_i32 = arith.constant 0 : i32
    %c0_i32_0 = arith.constant 0 : i32
    %c0_i32_1 = arith.constant 0 : i32
    return %c0_i32, %c0_i32_0 : i32, i32
  }
  func.func @transform_4(%arg0: i32) -> (i32, i32) {
    %c0_i32 = arith.constant 0 : i32
    %c0_i32_0 = arith.constant 0 : i32
    %c0_i32_1 = arith.constant 0 : i32
    return %c0_i32, %c0_i32_0 : i32, i32
  }
  func.func @transform_5(%arg0: i32) -> (i32, i32) {
    %c0_i32 = arith.constant 0 : i32
    %c0_i32_0 = arith.constant 0 : i32
    %c0_i32_1 = arith.constant 0 : i32
    return %c0_i32, %c0_i32_0 : i32, i32
  }
  func.func @transform_6(%arg0: i32) -> (i32, i32) {
    %c0_i32 = arith.constant 0 : i32
    %c0_i32_0 = arith.constant 0 : i32
    %c0_i32_1 = arith.constant 0 : i32
    return %c0_i32, %c0_i32_0 : i32, i32
  }
  func.func @transform_7(%arg0: i32) -> (i32, i32) {
    %c0_i32 = arith.constant 0 : i32
    %c0_i32_0 = arith.constant 0 : i32
    return %arg0, %c0_i32 : i32, i32
  }
}

module attributes {stable_mosaic.version = 11 : i64} {
  func.func @_attn_block_kernel(%arg0: i32, %arg1: memref<1x8x32xf32, #tpu.memory_space<vmem>>, %arg2: memref<1x8x32xf32, #tpu.memory_space<vmem>>, %arg3: memref<1x8x8xi8, #tpu.memory_space<vmem>>, %arg4: memref<32x32xbf16, #tpu.memory_space<vmem>>, %arg5: memref<1x32xf32, #tpu.memory_space<vmem>>, %arg6: memref<32x32xbf16, #tpu.memory_space<vmem>>, %arg7: memref<1x32xf32, #tpu.memory_space<vmem>>, %arg8: memref<32x32xbf16, #tpu.memory_space<vmem>>, %arg9: memref<1x32xf32, #tpu.memory_space<vmem>>, %arg10: memref<32x32xbf16, #tpu.memory_space<vmem>>, %arg11: memref<1x32xf32, #tpu.memory_space<vmem>>, %arg12: memref<1x32xf32, #tpu.memory_space<vmem>>, %arg13: memref<1x32xf32, #tpu.memory_space<vmem>>, %arg14: memref<1x8x32xf32, #tpu.memory_space<vmem>>) attributes {dimension_semantics = [#tpu.dimension_semantics<parallel>], iteration_bounds = array<i64: 2>, scalar_prefetch = 0 : i64, scratch_operands = 0 : i64, tpu.core_type = #tpu.core_type<tc>, window_params = [{transform_indices = @transform_0, window_bounds = array<i64: 1, 8, 32>}, {transform_indices = @transform_1, window_bounds = array<i64: 1, 8, 32>}, {transform_indices = @transform_2, window_bounds = array<i64: 1, 8, 8>}, {pipeline_mode = #tpu.pipeline_mode<synchronous>, transform_indices = @transform_3, window_bounds = array<i64: 32, 32>}, {pipeline_mode = #tpu.pipeline_mode<synchronous>, transform_indices = @transform_4, window_bounds = array<i64: 1, 32>}, {pipeline_mode = #tpu.pipeline_mode<synchronous>, transform_indices = @transform_5, window_bounds = array<i64: 32, 32>}, {pipeline_mode = #tpu.pipeline_mode<synchronous>, transform_indices = @transform_6, window_bounds = array<i64: 1, 32>}, {pipeline_mode = #tpu.pipeline_mode<synchronous>, transform_indices = @transform_7, window_bounds = array<i64: 32, 32>}, {pipeline_mode = #tpu.pipeline_mode<synchronous>, transform_indices = @transform_8, window_bounds = array<i64: 1, 32>}, {pipeline_mode = #tpu.pipeline_mode<synchronous>, transform_indices = @transform_9, window_bounds = array<i64: 32, 32>}, {pipeline_mode = #tpu.pipeline_mode<synchronous>, transform_indices = @transform_10, window_bounds = array<i64: 1, 32>}, {pipeline_mode = #tpu.pipeline_mode<synchronous>, transform_indices = @transform_11, window_bounds = array<i64: 1, 32>}, {pipeline_mode = #tpu.pipeline_mode<synchronous>, transform_indices = @transform_12, window_bounds = array<i64: 1, 32>}, {transform_indices = @transform_13, window_bounds = array<i64: 1, 8, 32>}]} {
    %c0 = arith.constant 0 : index
    %c0_0 = arith.constant 0 : index
    %c0_1 = arith.constant 0 : index
    %0 = vector.load %arg1[%c0, %c0_0, %c0_1] : memref<1x8x32xf32, #tpu.memory_space<vmem>>, vector<1x8x32xf32>
    %1 = vector.shape_cast %0 : vector<1x8x32xf32> to vector<8x32xf32>
    %c0_2 = arith.constant 0 : index
    %c0_3 = arith.constant 0 : index
    %c0_4 = arith.constant 0 : index
    %2 = vector.load %arg2[%c0_2, %c0_3, %c0_4] : memref<1x8x32xf32, #tpu.memory_space<vmem>>, vector<1x8x32xf32>
    %3 = vector.shape_cast %2 : vector<1x8x32xf32> to vector<8x32xf32>
    %c0_5 = arith.constant 0 : index
    %c0_6 = arith.constant 0 : index
    %c0_7 = arith.constant 0 : index
    %4 = vector.load %arg3[%c0_5, %c0_6, %c0_7] : memref<1x8x8xi8, #tpu.memory_space<vmem>>, vector<1x8x8xi8>
    %5 = vector.shape_cast %4 : vector<1x8x8xi8> to vector<8x8xi8>
    %6 = arith.extsi %5 : vector<8x8xi8> to vector<8x8xi32>
    %7 = arith.truncf %1 : vector<8x32xf32> to vector<8x32xbf16>
    %8 = arith.truncf %3 : vector<8x32xf32> to vector<8x32xbf16>
    %c0_8 = arith.constant 0 : index
    %c0_9 = arith.constant 0 : index
    %9 = vector.load %arg4[%c0_8, %c0_9] : memref<32x32xbf16, #tpu.memory_space<vmem>>, vector<32x32xbf16>
    %cst = arith.constant dense<0.000000e+00> : vector<8x32xf32>
    %10 = tpu.matmul %7, %9, %cst {dimension_numbers = #tpu.dot_dimension_numbers<[1], [0], [0], [1], [0, 0, 1, 1], [], []>} : vector<8x32xbf16>, vector<32x32xbf16>, vector<8x32xf32> -> vector<8x32xf32>
    %c0_10 = arith.constant 0 : index
    %c0_11 = arith.constant 0 : index
    %11 = vector.load %arg5[%c0_10, %c0_11] : memref<1x32xf32, #tpu.memory_space<vmem>>, vector<1x32xf32>
    %12 = vector.broadcast %11 : vector<1x32xf32> to vector<8x32xf32>
    %13 = arith.addf %10, %12 : vector<8x32xf32>
    %c0_12 = arith.constant 0 : index
    %c0_13 = arith.constant 0 : index
    %14 = vector.load %arg6[%c0_12, %c0_13] : memref<32x32xbf16, #tpu.memory_space<vmem>>, vector<32x32xbf16>
    %cst_14 = arith.constant dense<0.000000e+00> : vector<8x32xf32>
    %15 = tpu.matmul %8, %14, %cst_14 {dimension_numbers = #tpu.dot_dimension_numbers<[1], [0], [0], [1], [0, 0, 1, 1], [], []>} : vector<8x32xbf16>, vector<32x32xbf16>, vector<8x32xf32> -> vector<8x32xf32>
    %c0_15 = arith.constant 0 : index
    %c0_16 = arith.constant 0 : index
    %16 = vector.load %arg7[%c0_15, %c0_16] : memref<1x32xf32, #tpu.memory_space<vmem>>, vector<1x32xf32>
    %17 = vector.broadcast %16 : vector<1x32xf32> to vector<8x32xf32>
    %18 = arith.addf %15, %17 : vector<8x32xf32>
    %c0_17 = arith.constant 0 : index
    %c0_18 = arith.constant 0 : index
    %19 = vector.load %arg8[%c0_17, %c0_18] : memref<32x32xbf16, #tpu.memory_space<vmem>>, vector<32x32xbf16>
    %cst_19 = arith.constant dense<0.000000e+00> : vector<8x32xf32>
    %20 = tpu.matmul %8, %19, %cst_19 {dimension_numbers = #tpu.dot_dimension_numbers<[1], [0], [0], [1], [0, 0, 1, 1], [], []>} : vector<8x32xbf16>, vector<32x32xbf16>, vector<8x32xf32> -> vector<8x32xf32>
    %c0_20 = arith.constant 0 : index
    %c0_21 = arith.constant 0 : index
    %21 = vector.load %arg9[%c0_20, %c0_21] : memref<1x32xf32, #tpu.memory_space<vmem>>, vector<1x32xf32>
    %22 = vector.broadcast %21 : vector<1x32xf32> to vector<8x32xf32>
    %23 = arith.addf %20, %22 : vector<8x32xf32>
    %24 = vector.extract_strided_slice %13 {offsets = [0, 0], sizes = [8, 8], strides = [1, 1]} : vector<8x32xf32> to vector<8x8xf32>
    %25 = arith.truncf %24 : vector<8x8xf32> to vector<8x8xbf16>
    %26 = vector.extract_strided_slice %18 {offsets = [0, 0], sizes = [8, 8], strides = [1, 1]} : vector<8x32xf32> to vector<8x8xf32>
    %27 = arith.truncf %26 : vector<8x8xf32> to vector<8x8xbf16>
    %28 = vector.extract_strided_slice %23 {offsets = [0, 0], sizes = [8, 8], strides = [1, 1]} : vector<8x32xf32> to vector<8x8xf32>
    %29 = arith.truncf %28 : vector<8x8xf32> to vector<8x8xbf16>
    %cst_22 = arith.constant dense<0.000000e+00> : vector<8x8xf32>
    %30 = tpu.matmul %25, %27, %cst_22 {dimension_numbers = #tpu.dot_dimension_numbers<[1], [1], [0], [0], [0, 0, 1, 0], [], []>} : vector<8x8xbf16>, vector<8x8xbf16>, vector<8x8xf32> -> vector<8x8xf32>
    %c0_i32 = arith.constant 0 : i32
    %31 = vector.broadcast %c0_i32 : i32 to vector<8x8xi32>
    %32 = arith.cmpi eq, %6, %31 : vector<8x8xi32>
    %cst_23 = arith.constant -1.000000e+20 : f32
    %33 = vector.broadcast %cst_23 : f32 to vector<8x8xf32>
    %34 = arith.select %32, %33, %30 : vector<8x8xi1>, vector<8x8xf32>
    %cst_24 = arith.constant 0.176776692 : f32
    %35 = vector.broadcast %cst_24 : f32 to vector<8x8xf32>
    %36 = arith.mulf %34, %35 : vector<8x8xf32>
    %cst_25 = arith.constant dense<0xFF800000> : vector<8xf32>
    %37 = vector.multi_reduction <maximumf>, %36, %cst_25 [1] : vector<8x8xf32> to vector<8xf32>
    %38 = vector.shape_cast %37 : vector<8xf32> to vector<8x1xf32>
    %39 = vector.broadcast %38 : vector<8x1xf32> to vector<8x8xf32>
    %40 = arith.subf %36, %39 : vector<8x8xf32>
    %41 = math.exp %40 : vector<8x8xf32>
    %cst_26 = arith.constant dense<0.000000e+00> : vector<8xf32>
    %42 = vector.multi_reduction <add>, %41, %cst_26 [1] : vector<8x8xf32> to vector<8xf32>
    %43 = vector.shape_cast %42 : vector<8xf32> to vector<8x1xf32>
    %44 = tpu.reciprocal %43 {approx = true} : vector<8x1xf32> -> vector<8x1xf32>
    %45 = vector.broadcast %44 : vector<8x1xf32> to vector<8x8xf32>
    %46 = arith.mulf %41, %45 : vector<8x8xf32>
    %47 = arith.truncf %46 : vector<8x8xf32> to vector<8x8xbf16>
    %cst_27 = arith.constant dense<0.000000e+00> : vector<8x8xf32>
    %48 = tpu.matmul %47, %29, %cst_27 {dimension_numbers = #tpu.dot_dimension_numbers<[1], [0], [0], [1], [0, 0, 1, 1], [], []>} : vector<8x8xbf16>, vector<8x8xbf16>, vector<8x8xf32> -> vector<8x8xf32>
    %49 = vector.extract_strided_slice %13 {offsets = [0, 8], sizes = [8, 8], strides = [1, 1]} : vector<8x32xf32> to vector<8x8xf32>
    %50 = arith.truncf %49 : vector<8x8xf32> to vector<8x8xbf16>
    %51 = vector.extract_strided_slice %18 {offsets = [0, 8], sizes = [8, 8], strides = [1, 1]} : vector<8x32xf32> to vector<8x8xf32>
    %52 = arith.truncf %51 : vector<8x8xf32> to vector<8x8xbf16>
    %53 = vector.extract_strided_slice %23 {offsets = [0, 8], sizes = [8, 8], strides = [1, 1]} : vector<8x32xf32> to vector<8x8xf32>
    %54 = arith.truncf %53 : vector<8x8xf32> to vector<8x8xbf16>
    %cst_28 = arith.constant dense<0.000000e+00> : vector<8x8xf32>
    %55 = tpu.matmul %50, %52, %cst_28 {dimension_numbers = #tpu.dot_dimension_numbers<[1], [1], [0], [0], [0, 0, 1, 0], [], []>} : vector<8x8xbf16>, vector<8x8xbf16>, vector<8x8xf32> -> vector<8x8xf32>
    %c0_i32_29 = arith.constant 0 : i32
    %56 = vector.broadcast %c0_i32_29 : i32 to vector<8x8xi32>
    %57 = arith.cmpi eq, %6, %56 : vector<8x8xi32>
    %cst_30 = arith.constant -1.000000e+20 : f32
    %58 = vector.broadcast %cst_30 : f32 to vector<8x8xf32>
    %59 = arith.select %57, %58, %55 : vector<8x8xi1>, vector<8x8xf32>
    %cst_31 = arith.constant 0.176776692 : f32
    %60 = vector.broadcast %cst_31 : f32 to vector<8x8xf32>
    %61 = arith.mulf %59, %60 : vector<8x8xf32>
    %cst_32 = arith.constant dense<0xFF800000> : vector<8xf32>
    %62 = vector.multi_reduction <maximumf>, %61, %cst_32 [1] : vector<8x8xf32> to vector<8xf32>
    %63 = vector.shape_cast %62 : vector<8xf32> to vector<8x1xf32>
    %64 = vector.broadcast %63 : vector<8x1xf32> to vector<8x8xf32>
    %65 = arith.subf %61, %64 : vector<8x8xf32>
    %66 = math.exp %65 : vector<8x8xf32>
    %cst_33 = arith.constant dense<0.000000e+00> : vector<8xf32>
    %67 = vector.multi_reduction <add>, %66, %cst_33 [1] : vector<8x8xf32> to vector<8xf32>
    %68 = vector.shape_cast %67 : vector<8xf32> to vector<8x1xf32>
    %69 = tpu.reciprocal %68 {approx = true} : vector<8x1xf32> -> vector<8x1xf32>
    %70 = vector.broadcast %69 : vector<8x1xf32> to vector<8x8xf32>
    %71 = arith.mulf %66, %70 : vector<8x8xf32>
    %72 = arith.truncf %71 : vector<8x8xf32> to vector<8x8xbf16>
    %cst_34 = arith.constant dense<0.000000e+00> : vector<8x8xf32>
    %73 = tpu.matmul %72, %54, %cst_34 {dimension_numbers = #tpu.dot_dimension_numbers<[1], [0], [0], [1], [0, 0, 1, 1], [], []>} : vector<8x8xbf16>, vector<8x8xbf16>, vector<8x8xf32> -> vector<8x8xf32>
    %74 = vector.extract_strided_slice %13 {offsets = [0, 16], sizes = [8, 8], strides = [1, 1]} : vector<8x32xf32> to vector<8x8xf32>
    %75 = arith.truncf %74 : vector<8x8xf32> to vector<8x8xbf16>
    %76 = vector.extract_strided_slice %18 {offsets = [0, 16], sizes = [8, 8], strides = [1, 1]} : vector<8x32xf32> to vector<8x8xf32>
    %77 = arith.truncf %76 : vector<8x8xf32> to vector<8x8xbf16>
    %78 = vector.extract_strided_slice %23 {offsets = [0, 16], sizes = [8, 8], strides = [1, 1]} : vector<8x32xf32> to vector<8x8xf32>
    %79 = arith.truncf %78 : vector<8x8xf32> to vector<8x8xbf16>
    %cst_35 = arith.constant dense<0.000000e+00> : vector<8x8xf32>
    %80 = tpu.matmul %75, %77, %cst_35 {dimension_numbers = #tpu.dot_dimension_numbers<[1], [1], [0], [0], [0, 0, 1, 0], [], []>} : vector<8x8xbf16>, vector<8x8xbf16>, vector<8x8xf32> -> vector<8x8xf32>
    %c0_i32_36 = arith.constant 0 : i32
    %81 = vector.broadcast %c0_i32_36 : i32 to vector<8x8xi32>
    %82 = arith.cmpi eq, %6, %81 : vector<8x8xi32>
    %cst_37 = arith.constant -1.000000e+20 : f32
    %83 = vector.broadcast %cst_37 : f32 to vector<8x8xf32>
    %84 = arith.select %82, %83, %80 : vector<8x8xi1>, vector<8x8xf32>
    %cst_38 = arith.constant 0.176776692 : f32
    %85 = vector.broadcast %cst_38 : f32 to vector<8x8xf32>
    %86 = arith.mulf %84, %85 : vector<8x8xf32>
    %cst_39 = arith.constant dense<0xFF800000> : vector<8xf32>
    %87 = vector.multi_reduction <maximumf>, %86, %cst_39 [1] : vector<8x8xf32> to vector<8xf32>
    %88 = vector.shape_cast %87 : vector<8xf32> to vector<8x1xf32>
    %89 = vector.broadcast %88 : vector<8x1xf32> to vector<8x8xf32>
    %90 = arith.subf %86, %89 : vector<8x8xf32>
    %91 = math.exp %90 : vector<8x8xf32>
    %cst_40 = arith.constant dense<0.000000e+00> : vector<8xf32>
    %92 = vector.multi_reduction <add>, %91, %cst_40 [1] : vector<8x8xf32> to vector<8xf32>
    %93 = vector.shape_cast %92 : vector<8xf32> to vector<8x1xf32>
    %94 = tpu.reciprocal %93 {approx = true} : vector<8x1xf32> -> vector<8x1xf32>
    %95 = vector.broadcast %94 : vector<8x1xf32> to vector<8x8xf32>
    %96 = arith.mulf %91, %95 : vector<8x8xf32>
    %97 = arith.truncf %96 : vector<8x8xf32> to vector<8x8xbf16>
    %cst_41 = arith.constant dense<0.000000e+00> : vector<8x8xf32>
    %98 = tpu.matmul %97, %79, %cst_41 {dimension_numbers = #tpu.dot_dimension_numbers<[1], [0], [0], [1], [0, 0, 1, 1], [], []>} : vector<8x8xbf16>, vector<8x8xbf16>, vector<8x8xf32> -> vector<8x8xf32>
    %99 = vector.extract_strided_slice %13 {offsets = [0, 24], sizes = [8, 8], strides = [1, 1]} : vector<8x32xf32> to vector<8x8xf32>
    %100 = arith.truncf %99 : vector<8x8xf32> to vector<8x8xbf16>
    %101 = vector.extract_strided_slice %18 {offsets = [0, 24], sizes = [8, 8], strides = [1, 1]} : vector<8x32xf32> to vector<8x8xf32>
    %102 = arith.truncf %101 : vector<8x8xf32> to vector<8x8xbf16>
    %103 = vector.extract_strided_slice %23 {offsets = [0, 24], sizes = [8, 8], strides = [1, 1]} : vector<8x32xf32> to vector<8x8xf32>
    %104 = arith.truncf %103 : vector<8x8xf32> to vector<8x8xbf16>
    %cst_42 = arith.constant dense<0.000000e+00> : vector<8x8xf32>
    %105 = tpu.matmul %100, %102, %cst_42 {dimension_numbers = #tpu.dot_dimension_numbers<[1], [1], [0], [0], [0, 0, 1, 0], [], []>} : vector<8x8xbf16>, vector<8x8xbf16>, vector<8x8xf32> -> vector<8x8xf32>
    %c0_i32_43 = arith.constant 0 : i32
    %106 = vector.broadcast %c0_i32_43 : i32 to vector<8x8xi32>
    %107 = arith.cmpi eq, %6, %106 : vector<8x8xi32>
    %cst_44 = arith.constant -1.000000e+20 : f32
    %108 = vector.broadcast %cst_44 : f32 to vector<8x8xf32>
    %109 = arith.select %107, %108, %105 : vector<8x8xi1>, vector<8x8xf32>
    %cst_45 = arith.constant 0.176776692 : f32
    %110 = vector.broadcast %cst_45 : f32 to vector<8x8xf32>
    %111 = arith.mulf %109, %110 : vector<8x8xf32>
    %cst_46 = arith.constant dense<0xFF800000> : vector<8xf32>
    %112 = vector.multi_reduction <maximumf>, %111, %cst_46 [1] : vector<8x8xf32> to vector<8xf32>
    %113 = vector.shape_cast %112 : vector<8xf32> to vector<8x1xf32>
    %114 = vector.broadcast %113 : vector<8x1xf32> to vector<8x8xf32>
    %115 = arith.subf %111, %114 : vector<8x8xf32>
    %116 = math.exp %115 : vector<8x8xf32>
    %cst_47 = arith.constant dense<0.000000e+00> : vector<8xf32>
    %117 = vector.multi_reduction <add>, %116, %cst_47 [1] : vector<8x8xf32> to vector<8xf32>
    %118 = vector.shape_cast %117 : vector<8xf32> to vector<8x1xf32>
    %119 = tpu.reciprocal %118 {approx = true} : vector<8x1xf32> -> vector<8x1xf32>
    %120 = vector.broadcast %119 : vector<8x1xf32> to vector<8x8xf32>
    %121 = arith.mulf %116, %120 : vector<8x8xf32>
    %122 = arith.truncf %121 : vector<8x8xf32> to vector<8x8xbf16>
    %cst_48 = arith.constant dense<0.000000e+00> : vector<8x8xf32>
    %123 = tpu.matmul %122, %104, %cst_48 {dimension_numbers = #tpu.dot_dimension_numbers<[1], [0], [0], [1], [0, 0, 1, 1], [], []>} : vector<8x8xbf16>, vector<8x8xbf16>, vector<8x8xf32> -> vector<8x8xf32>
    %124 = tpu.concatenate %48, %73, %98, %123 in 1 : vector<8x8xf32>, vector<8x8xf32>, vector<8x8xf32>, vector<8x8xf32> -> vector<8x32xf32>
    %125 = arith.truncf %124 : vector<8x32xf32> to vector<8x32xbf16>
    %c0_49 = arith.constant 0 : index
    %c0_50 = arith.constant 0 : index
    %126 = vector.load %arg10[%c0_49, %c0_50] : memref<32x32xbf16, #tpu.memory_space<vmem>>, vector<32x32xbf16>
    %cst_51 = arith.constant dense<0.000000e+00> : vector<8x32xf32>
    %127 = tpu.matmul %125, %126, %cst_51 {dimension_numbers = #tpu.dot_dimension_numbers<[1], [0], [0], [1], [0, 0, 1, 1], [], []>} : vector<8x32xbf16>, vector<32x32xbf16>, vector<8x32xf32> -> vector<8x32xf32>
    %c0_52 = arith.constant 0 : index
    %c0_53 = arith.constant 0 : index
    %128 = vector.load %arg11[%c0_52, %c0_53] : memref<1x32xf32, #tpu.memory_space<vmem>>, vector<1x32xf32>
    %129 = vector.broadcast %128 : vector<1x32xf32> to vector<8x32xf32>
    %130 = arith.addf %127, %129 : vector<8x32xf32>
    %131 = arith.addf %1, %130 : vector<8x32xf32>
    %cst_54 = arith.constant dense<0.000000e+00> : vector<8xf32>
    %132 = vector.multi_reduction <add>, %131, %cst_54 [1] : vector<8x32xf32> to vector<8xf32>
    %133 = vector.shape_cast %132 : vector<8xf32> to vector<8x1xf32>
    %cst_55 = arith.constant 3.200000e+01 : f32
    %134 = vector.broadcast %cst_55 : f32 to vector<8x1xf32>
    %135 = arith.divf %133, %134 : vector<8x1xf32>
    %136 = vector.broadcast %135 : vector<8x1xf32> to vector<8x32xf32>
    %137 = arith.subf %131, %136 : vector<8x32xf32>
    %138 = arith.mulf %137, %137 : vector<8x32xf32>
    %cst_56 = arith.constant dense<0.000000e+00> : vector<8xf32>
    %139 = vector.multi_reduction <add>, %138, %cst_56 [1] : vector<8x32xf32> to vector<8xf32>
    %140 = vector.shape_cast %139 : vector<8xf32> to vector<8x1xf32>
    %cst_57 = arith.constant 3.200000e+01 : f32
    %141 = vector.broadcast %cst_57 : f32 to vector<8x1xf32>
    %142 = arith.divf %140, %141 : vector<8x1xf32>
    %143 = vector.broadcast %135 : vector<8x1xf32> to vector<8x32xf32>
    %144 = arith.subf %131, %143 : vector<8x32xf32>
    %cst_58 = arith.constant 9.99999974E-6 : f32
    %145 = vector.broadcast %cst_58 : f32 to vector<8x1xf32>
    %146 = arith.addf %142, %145 : vector<8x1xf32>
    %147 = math.rsqrt %146 : vector<8x1xf32>
    %148 = vector.broadcast %147 : vector<8x1xf32> to vector<8x32xf32>
    %149 = arith.mulf %144, %148 : vector<8x32xf32>
    %c0_59 = arith.constant 0 : index
    %c0_60 = arith.constant 0 : index
    %150 = vector.load %arg12[%c0_59, %c0_60] : memref<1x32xf32, #tpu.memory_space<vmem>>, vector<1x32xf32>
    %151 = vector.broadcast %150 : vector<1x32xf32> to vector<8x32xf32>
    %152 = arith.mulf %149, %151 : vector<8x32xf32>
    %c0_61 = arith.constant 0 : index
    %c0_62 = arith.constant 0 : index
    %153 = vector.load %arg13[%c0_61, %c0_62] : memref<1x32xf32, #tpu.memory_space<vmem>>, vector<1x32xf32>
    %154 = vector.broadcast %153 : vector<1x32xf32> to vector<8x32xf32>
    %155 = arith.addf %152, %154 : vector<8x32xf32>
    %c0_63 = arith.constant 0 : index
    %c0_64 = arith.constant 0 : index
    %c0_65 = arith.constant 0 : index
    %156 = vector.load %arg14[%c0_63, %c0_64, %c0_65] : memref<1x8x32xf32, #tpu.memory_space<vmem>>, vector<1x8x32xf32>
    %157 = vector.shape_cast %156 : vector<1x8x32xf32> to vector<8x32xf32>
    %158 = vector.shape_cast %155 : vector<8x32xf32> to vector<1x8x32xf32>
    tpu.vector_store %arg14[%c0_63, %c0_64, %c0_65], %158 {strides = array<i32>} : memref<1x8x32xf32, #tpu.memory_space<vmem>>, vector<1x8x32xf32>,
    return
  }
  func.func @transform_0(%arg0: i32) -> (i32, i32, i32) {
    %c0_i32 = arith.constant 0 : i32
    %c0_i32_0 = arith.constant 0 : i32
    %c0_i32_1 = arith.constant 0 : i32
    return %arg0, %c0_i32, %c0_i32_0 : i32, i32, i32
  }
  func.func @transform_1(%arg0: i32) -> (i32, i32, i32) {
    %c0_i32 = arith.constant 0 : i32
    %c0_i32_0 = arith.constant 0 : i32
    %c0_i32_1 = arith.constant 0 : i32
    return %arg0, %c0_i32, %c0_i32_0 : i32, i32, i32
  }
  func.func @transform_2(%arg0: i32) -> (i32, i32, i32) {
    %c0_i32 = arith.constant 0 : i32
    %c0_i32_0 = arith.constant 0 : i32
    %c0_i32_1 = arith.constant 0 : i32
    return %arg0, %c0_i32, %c0_i32_0 : i32, i32, i32
  }
  func.func @transform_3(%arg0: i32) -> (i32, i32) {
    %c0_i32 = arith.constant 0 : i32
    %c0_i32_0 = arith.constant 0 : i32
    %c0_i32_1 = arith.constant 0 : i32
    return %c0_i32, %c0_i32_0 : i32, i32
  }
  func.func @transform_4(%arg0: i32) -> (i32, i32) {
    %c0_i32 = arith.constant 0 : i32
    %c0_i32_0 = arith.constant 0 : i32
    %c0_i32_1 = arith.constant 0 : i32
    return %c0_i32, %c0_i32_0 : i32, i32
  }
  func.func @transform_5(%arg0: i32) -> (i32, i32) {
    %c0_i32 = arith.constant 0 : i32
    %c0_i32_0 = arith.constant 0 : i32
    %c0_i32_1 = arith.constant 0 : i32
    return %c0_i32, %c0_i32_0 : i32, i32
  }
  func.func @transform_6(%arg0: i32) -> (i32, i32) {
    %c0_i32 = arith.constant 0 : i32
    %c0_i32_0 = arith.constant 0 : i32
    %c0_i32_1 = arith.constant 0 : i32
    return %c0_i32, %c0_i32_0 : i32, i32
  }
  func.func @transform_7(%arg0: i32) -> (i32, i32) {
    %c0_i32 = arith.constant 0 : i32
    %c0_i32_0 = arith.constant 0 : i32
    %c0_i32_1 = arith.constant 0 : i32
    return %c0_i32, %c0_i32_0 : i32, i32
  }
  func.func @transform_8(%arg0: i32) -> (i32, i32) {
    %c0_i32 = arith.constant 0 : i32
    %c0_i32_0 = arith.constant 0 : i32
    %c0_i32_1 = arith.constant 0 : i32
    return %c0_i32, %c0_i32_0 : i32, i32
  }
  func.func @transform_9(%arg0: i32) -> (i32, i32) {
    %c0_i32 = arith.constant 0 : i32
    %c0_i32_0 = arith.constant 0 : i32
    %c0_i32_1 = arith.constant 0 : i32
    return %c0_i32, %c0_i32_0 : i32, i32
  }
  func.func @transform_10(%arg0: i32) -> (i32, i32) {
    %c0_i32 = arith.constant 0 : i32
    %c0_i32_0 = arith.constant 0 : i32
    %c0_i32_1 = arith.constant 0 : i32
    return %c0_i32, %c0_i32_0 : i32, i32
  }
  func.func @transform_11(%arg0: i32) -> (i32, i32) {
    %c0_i32 = arith.constant 0 : i32
    %c0_i32_0 = arith.constant 0 : i32
    %c0_i32_1 = arith.constant 0 : i32
    return %c0_i32, %c0_i32_0 : i32, i32
  }
  func.func @transform_12(%arg0: i32) -> (i32, i32) {
    %c0_i32 = arith.constant 0 : i32
    %c0_i32_0 = arith.constant 0 : i32
    %c0_i32_1 = arith.constant 0 : i32
    return %c0_i32, %c0_i32_0 : i32, i32
  }
  func.func @transform_13(%arg0: i32) -> (i32, i32, i32) {
    %c0_i32 = arith.constant 0 : i32
    %c0_i32_0 = arith.constant 0 : i32
    %c0_i32_1 = arith.constant 0 : i32
    return %arg0, %c0_i32, %c0_i32_0 : i32, i32, i32
  }
}

module attributes {stable_mosaic.version = 11 : i64} {
  func.func @_matmul_bias_kernel(%arg0: i32, %arg1: i32, %arg2: i32, %arg3: memref<16x128xbf16, #tpu.memory_space<vmem>>, %arg4: memref<128x128xbf16, #tpu.memory_space<vmem>>, %arg5: memref<1x128xf32, #tpu.memory_space<vmem>>, %arg6: memref<16x128xf32, #tpu.memory_space<vmem>>, %arg7: memref<16x128xf32, #tpu.memory_space<vmem>>) attributes {dimension_semantics = [#tpu.dimension_semantics<parallel>, #tpu.dimension_semantics<parallel>, #tpu.dimension_semantics<arbitrary>], iteration_bounds = array<i64: 1, 1, 1>, scalar_prefetch = 0 : i64, scratch_operands = 1 : i64, tpu.core_type = #tpu.core_type<tc>, window_params = [{transform_indices = @transform_0, window_bounds = array<i64: 16, 128>}, {transform_indices = @transform_1, window_bounds = array<i64: 128, 128>}, {transform_indices = @transform_2, window_bounds = array<i64: 1, 128>}, {transform_indices = @transform_3, window_bounds = array<i64: 16, 128>}]} {
    %c0_i32 = arith.constant 0 : i32
    %0 = arith.cmpi eq, %arg2, %c0_i32 : i32
    %1 = arith.extui %0 : i1 to i32
    %c0_i32_0 = arith.constant 0 : i32
    %2 = arith.cmpi ne, %1, %c0_i32_0 : i32
    scf.if %2 {
      %cst_10 = arith.constant 0.000000e+00 : f32
      %12 = vector.broadcast %cst_10 : f32 to vector<16x128xf32>
      %c0_11 = arith.constant 0 : index
      %c0_12 = arith.constant 0 : index
      %13 = vector.load %arg7[%c0_11, %c0_12] : memref<16x128xf32, #tpu.memory_space<vmem>>, vector<16x128xf32>
      tpu.vector_store %arg7[%c0_11, %c0_12], %12 {strides = array<i32>} : memref<16x128xf32, #tpu.memory_space<vmem>>, vector<16x128xf32>,
    } else {
    }
    %c0 = arith.constant 0 : index
    %c0_1 = arith.constant 0 : index
    %3 = vector.load %arg7[%c0, %c0_1] : memref<16x128xf32, #tpu.memory_space<vmem>>, vector<16x128xf32>
    %c0_2 = arith.constant 0 : index
    %c0_3 = arith.constant 0 : index
    %4 = vector.load %arg3[%c0_2, %c0_3] : memref<16x128xbf16, #tpu.memory_space<vmem>>, vector<16x128xbf16>
    %c0_4 = arith.constant 0 : index
    %c0_5 = arith.constant 0 : index
    %5 = vector.load %arg4[%c0_4, %c0_5] : memref<128x128xbf16, #tpu.memory_space<vmem>>, vector<128x128xbf16>
    %cst = arith.constant dense<0.000000e+00> : vector<16x128xf32>
    %6 = tpu.matmul %4, %5, %cst {dimension_numbers = #tpu.dot_dimension_numbers<[1], [0], [0], [1], [0, 0, 1, 1], [], []>} : vector<16x128xbf16>, vector<128x128xbf16>, vector<16x128xf32> -> vector<16x128xf32>
    %7 = arith.addf %3, %6 : vector<16x128xf32>
    %c0_6 = arith.constant 0 : index
    %c0_7 = arith.constant 0 : index
    %8 = vector.load %arg7[%c0_6, %c0_7] : memref<16x128xf32, #tpu.memory_space<vmem>>, vector<16x128xf32>
    tpu.vector_store %arg7[%c0_6, %c0_7], %7 {strides = array<i32>} : memref<16x128xf32, #tpu.memory_space<vmem>>, vector<16x128xf32>,
    %c0_i32_8 = arith.constant 0 : i32
    %9 = arith.cmpi eq, %arg2, %c0_i32_8 : i32
    %10 = arith.extui %9 : i1 to i32
    %c0_i32_9 = arith.constant 0 : i32
    %11 = arith.cmpi ne, %10, %c0_i32_9 : i32
    scf.if %11 {
      %c0_10 = arith.constant 0 : index
      %c0_11 = arith.constant 0 : index
      %12 = vector.load %arg7[%c0_10, %c0_11] : memref<16x128xf32, #tpu.memory_space<vmem>>, vector<16x128xf32>
      %c0_12 = arith.constant 0 : index
      %c0_13 = arith.constant 0 : index
      %13 = vector.load %arg5[%c0_12, %c0_13] : memref<1x128xf32, #tpu.memory_space<vmem>>, vector<1x128xf32>
      %14 = vector.broadcast %13 : vector<1x128xf32> to vector<16x128xf32>
      %15 = arith.addf %12, %14 : vector<16x128xf32>
      %c0_14 = arith.constant 0 : index
      %c0_15 = arith.constant 0 : index
      %16 = vector.load %arg6[%c0_14, %c0_15] : memref<16x128xf32, #tpu.memory_space<vmem>>, vector<16x128xf32>
      tpu.vector_store %arg6[%c0_14, %c0_15], %15 {strides = array<i32>} : memref<16x128xf32, #tpu.memory_space<vmem>>, vector<16x128xf32>,
    } else {
    }
    return
  }
  func.func @transform_0(%arg0: i32, %arg1: i32, %arg2: i32) -> (i32, i32) {
    %c0_i32 = arith.constant 0 : i32
    return %arg0, %arg2 : i32, i32
  }
  func.func @transform_1(%arg0: i32, %arg1: i32, %arg2: i32) -> (i32, i32) {
    %c0_i32 = arith.constant 0 : i32
    return %arg2, %arg1 : i32, i32
  }
  func.func @transform_2(%arg0: i32, %arg1: i32, %arg2: i32) -> (i32, i32) {
    %c0_i32 = arith.constant 0 : i32
    %c0_i32_0 = arith.constant 0 : i32
    return %c0_i32, %arg1 : i32, i32
  }
  func.func @transform_3(%arg0: i32, %arg1: i32, %arg2: i32) -> (i32, i32) {
    %c0_i32 = arith.constant 0 : i32
    return %arg0, %arg1 : i32, i32
  }
}

</mosaic_0001>

<bundles_post_ra>
// kernel: tile.103
= control target key start
LH: loop header
LB: loop body
LE: loop exit
PB: predicated region body
PF: predicated region fallthrough
CT: control target
= control target key end

     0   :  { %s22_s0 = inlined_call_operand.vmem [shape: f32[8], index: 0, kind: input, shape index: {}]   ;;  %s23_s1 = inlined_call_operand.vmem [shape: f32[4,8], index: 1, kind: output, shape index: {}]  }
   0x1   :  { %v4_v0 = vld [vmem:[%s22_s0] ss:$0 sm:$0xff] }
   0x2   :  { %5 = vst [vmem:[%s23_s1] sm:$0xf] %v4_v0 }

// kernel: tile.104
= control target key start
LH: loop header
LB: loop body
LE: loop exit
PB: predicated region body
PF: predicated region fallthrough
CT: control target
= control target key end

     0   :  { %s37_s8 = smov 8   ;;  %s38_s9 = smov 16   ;;  %vm7_vm0 = vcmask 64512   ;;  %vm13_vm1 = vcmask 261312   ;;  %vm19_vm2 = vcmask 195712   ;;  %vm25_vm3 = vcmask 130112   ;;  %s55_s0 = inlined_call_operand.vmem [shape: f32[4,8], index: 0, kind: input, shape index: {}]   ;;  %s56_s1 = inlined_call_operand.vmem [shape: f32[1,32], index: 1, kind: output, shape index: {}]  }
   0x1   :  { %v4_v0 = vld [vmem:[%s55_s0] sm:$0xf]  ;;  %s36_s0 = smov 24  }
   0x2   :  { %5 = vst [vmem:[#allocation1] sm:$0xf] %v4_v0 }
   0x9   :  { %v10_v1 = vld [vmem:[#allocation1 + $0x3] sm:$0x1]   ;;  %v22_v2 = vld [vmem:[#allocation1 + $0x1] sm:$0x1]   ;;  %v16_v3 = vld [vmem:[#allocation1 + $0x2] sm:$0x1]  }
   0xa   :  { %11 = vrot.lane.b32.xlu0 %v10_v1, %s36_s0  ;;  %23 = vrot.lane.b32.xlu1 %v22_v2, %s37_s8  ;;  %v6_v4 = vld [vmem:[#allocation1] sm:$0x1]  }
   0xb   :  { %8 = vst.msk [vmem:[#allocation0] sm:$0x1] %vm7_vm0, %v6_v4  }
  0x12   :  { %17 = vrot.lane.b32.xlu0 %v16_v3, %s38_s9 }
  0x7c   :  { %v12_v5 = vpop.permute.xlu0 %11   ;;  %v24_v6 = vpop.permute.xlu1 %23  }
  0x7d   :  { %14 = vst.msk [vmem:[#allocation0] sm:$0x1] %vm13_vm1, %v12_v5  }
  0x84   :  { %v18_v7 = vpop.permute.xlu0 %17  }
  0x85   :  { %20 = vst.msk [vmem:[#allocation0] sm:$0x1] %vm19_vm2, %v18_v7  }
  0x86   :  { %26 = vst.msk [vmem:[#allocation0] sm:$0x1] %vm25_vm3, %v24_v6  }
  0x8d   :  { %v29_v8 = vld [vmem:[#allocation0] sm:$0x1] }
  0x8e   :  { %32 = vst [vmem:[%s56_s1] sm:$0x1] %v29_v8 }

// kernel: transformer_fwd.12
= control target key start
LH: loop header
LB: loop body
LE: loop exit
PB: predicated region body
PF: predicated region fallthrough
CT: control target
= control target key end

     0   :  { %vm50_vm0 = vcmask 261120   ;;  %v286_v30 = vmov 32.0   ;;  %s388_s1 = inlined_call_operand.vmem [shape: bf16[32,128], index: 1, kind: input, shape index: {}]   ;;  %s389_s0 = inlined_call_operand.vmem [shape: f32[16,32], index: 0, kind: input, shape index: {}]   ;;  %s390_s3 = inlined_call_operand.vmem [shape: bf16[128,32], index: 3, kind: input, shape index: {}]   ;;  %s391_s2 = inlined_call_operand.vmem [shape: f32[1,128], index: 2, kind: input, shape index: {}]   ;;  %s392_s4 = inlined_call_operand.vmem [shape: f32[1,32], index: 4, kind: input, shape index: {}]   ;;  %s393_s5 = inlined_call_operand.vmem [shape: f32[1,32], index: 5, kind: input, shape index: {}]   ;;  %s394_s6 = inlined_call_operand.vmem [shape: f32[1,32], index: 6, kind: input, shape index: {}]   ;;  %s395_s7 = inlined_call_operand.vmem [shape: f32[16,32], index: 7, kind: output, shape index: {}]  }
   0x1   :  { %v266_v0 = vld [vmem:[%s388_s1 + $0x8] sm:$0xff]  ;;  %v265_v1 = vld [vmem:[%s388_s1] sm:$0xff]  ;;  %v274_v2 = vld [vmem:[%s390_s3 + $0x38] sm:$0xff]  ;;  %280 = vrcp.f32 %v286_v30 }
   0x2   :  { %60 = vmatpush.bf16.msra.mxu0 %v266_v0  ;;  %v27_v3 = vld [vmem:[%s389_s0] sm:$0xff]  ;;  %v28_v4 = vld [vmem:[%s389_s0 + $0x8] sm:$0xff]  ;;  %139 = vmatpush.bf16.msra.mxu1 %v274_v2  ;;  %v273_v5 = vld [vmem:[%s390_s3 + $0x30] sm:$0xff] }
   0x3   :  { %v29_v6 = vpack.c.bf16 %v28_v4, %v27_v3  ;;  %v272_v7 = vld [vmem:[%s390_s3 + $0x28] sm:$0xff]  ;;  %v271_v8 = vld [vmem:[%s390_s3 + $0x20] sm:$0xff]  ;;  %v270_v9 = vld [vmem:[%s390_s3 + $0x18] sm:$0xff] }
   0x4   :  { %v269_v10 = vld [vmem:[%s390_s3 + $0x10] sm:$0xff]  ;;  %v268_v11 = vld [vmem:[%s390_s3 + $0x8] sm:$0xff]  ;;  %v267_v12 = vld [vmem:[%s390_s3] sm:$0xff] }
   0x5   :  { %v276_v14 = vld [vmem:[%s391_s2] ss:$0 sm:$0xff] }
   0x6   :  { %61 = vmatpush.bf16.msra.mxu0 %v265_v1  ;;  %140 = vmatpush.bf16.msra.mxu1 %v273_v5  ;;  %v277_v21 = vld [vmem:[%s392_s4] ss:$0 sm:$0xff] }
   0x7   :  { %v281_v31 = vpop.eup %280  ;;  %v278_v61 = vld [vmem:[%s393_s5] ss:$0 sm:$0xff] }
   0x8   :  { %v162_v32 = vmul.f32 32.0, %v281_v31  ;;  %vm166_vm1 = vweird.f32 %v281_v31  ;;  %v279_v0 = vld [vmem:[%s394_s6] ss:$0 sm:$0xff] }
   0x9   :  { %232 = vmatmul.msk.bf16.vlgmr.msra.gmra.mxu0 %vm50_vm0, %v29_v6 }
   0xa   :  { %141 = vmatpush.bf16.msra.mxu1 %v272_v7  ;;  %v163_v33 = vsub.f32 1.0, %v162_v32 }
   0xc   :  { %v164_v34 = vmul.f32 %v281_v31, %v163_v33 }
   0xe   :  { %142 = vmatpush.bf16.msra.mxu1 %v271_v8  ;;  %v165_v35 = vadd.f32 %v281_v31, %v164_v34 }
  0x10   :  { %v167_v36 = vsel %vm166_vm1, %v281_v31, %v165_v35 }
  0x12   :  { %143 = vmatpush.bf16.msra.mxu1 %v270_v9 }
  0x16   :  { %144 = vmatpush.bf16.msra.mxu1 %v269_v10 }
  0x1a   :  { %145 = vmatpush.bf16.msra.mxu1 %v268_v11 }
  0x1e   :  { %146 = vmatpush.bf16.msra.mxu1 %v267_v12 }
  0x86   :  { %v63_v13 = vpop.f32.mrf.mxu0 }
  0x87   :  { %v64_v15 = vadd.f32 %v276_v14, %v63_v13 }
  0x89   :  { %v68_v18 = vmax.f32 %v64_v15, 0.0 }
  0x8e   :  { %v65_v16 = vpop.f32.mrf.mxu0 }
  0x8f   :  { %v66_v17 = vadd.f32 %v276_v14, %v65_v16 }
  0x91   :  { %v69_v19 = vmax.f32 %v66_v17, 0.0 }
  0x93   :  { %v70_v20 = vpack.c.bf16 %v69_v19, %v68_v18 }
  0x95   :  { %147 = vmatmul.bf16.vlgmr.msra.gmra.mxu1 %v70_v20 }
 0x112   :  { %v148_v22 = vpop.f32.mrf.mxu1 }
 0x113   :  { %v149_v23 = vadd.f32 %v277_v21, %v148_v22 }
 0x115   :  { %v153_v24 = vadd.f32 %v149_v23, %v27_v3 }
 0x117   :  { %v155_v25 = vsel %vm50_vm0, %v153_v24, 0.0 }
 0x118   :  { %156 = vadd.xlane.f32.xlu0 %v155_v25 }
 0x11a   :  { %v150_v26 = vpop.f32.mrf.mxu1 }
 0x11b   :  { %v151_v27 = vadd.f32 %v277_v21, %v150_v26 }
 0x11d   :  { %v154_v28 = vadd.f32 %v151_v27, %v28_v4 }
 0x11f   :  { %v158_v29 = vsel %vm50_vm0, %v154_v28, 0.0 }
 0x120   :  { %159 = vadd.xlane.f32.xlu0 %v158_v29 }
 0x18b   :  { %v157_v37 = vpop.xlane.xlu0 %156 }
 0x18c   :  { %v168_v38 = vmul.f32 %v167_v36, %v157_v37 }
 0x18e   :  { %v170_v39 = vsub.f32 %v153_v24, %v168_v38 }
 0x190   :  { %v172_v40 = vmul.f32 %v170_v39, %v170_v39 }
 0x192   :  { %v174_v41 = vsel %vm50_vm0, %v172_v40, 0.0 }
 0x193   :  { %175 = vadd.xlane.f32.xlu1 %v174_v41  ;;  %v160_v42 = vpop.xlane.xlu0 %159 }
 0x194   :  { %v169_v43 = vmul.f32 %v167_v36, %v160_v42 }
 0x196   :  { %v171_v44 = vsub.f32 %v154_v28, %v169_v43 }
 0x198   :  { %v173_v45 = vmul.f32 %v171_v44, %v171_v44 }
 0x19a   :  { %v177_v46 = vsel %vm50_vm0, %v173_v45, 0.0 }
 0x19b   :  { %178 = vadd.xlane.f32.xlu1 %v177_v46 }
 0x206   :  { %v176_v47 = vpop.xlane.xlu1 %175 }
 0x207   :  { %v180_v48 = vmul.f32 %v176_v47, %v167_v36 }
 0x209   :  { %v182_v49 = vadd.f32 1e-05, %v180_v48 }
 0x20b   :  { %282 = vrsqrt.f32 %v182_v49  ;;  %vm190_vm3 = vweird.f32 %v182_v49 }
 0x20e   :  { %v179_v50 = vpop.xlane.xlu1 %178 }
 0x20f   :  { %v181_v51 = vmul.f32 %v179_v50, %v167_v36 }
 0x211   :  { %v283_v52 = vpop.eup %282  ;;  %v183_v53 = vadd.f32 1e-05, %v181_v51 }
 0x212   :  { %v185_v54 = vmul.f32 %v283_v52, %v182_v49  ;;  %vm191_vm2 = vweird.f32 %v283_v52 }
 0x213   :  { %284 = vrsqrt.f32 %v183_v53  ;;  %vm192_vm4 = vmor %vm190_vm3, %vm191_vm2  ;;  %vm200_vm6 = vweird.f32 %v183_v53 }
 0x214   :  { %v186_v55 = vmul.f32 %v283_v52, %v185_v54 }
 0x216   :  { %v187_v56 = vmul.f32 0.5, %v186_v55 }
 0x218   :  { %v188_v57 = vsub.f32 1.5, %v187_v56 }
 0x219   :  { %v285_v58 = vpop.eup %284 }
 0x21a   :  { %v189_v59 = vmul.f32 %v283_v52, %v188_v57  ;;  %v195_v60 = vmul.f32 %v285_v58, %v183_v53  ;;  %vm201_vm5 = vweird.f32 %v285_v58 }
 0x21b   :  { %vm202_vm7 = vmor %vm200_vm6, %vm201_vm5 }
 0x21c   :  { %v193_v62 = vsel %vm192_vm4, %v283_v52, %v189_v59  ;;  %v196_v63 = vmul.f32 %v285_v58, %v195_v60 }
 0x21d   :  { %v204_v1 = vmul.f32 %v193_v62, %v170_v39 }
 0x21e   :  { %v197_v2 = vmul.f32 0.5, %v196_v63 }
 0x21f   :  { %v210_v3 = vmul.f32 %v278_v61, %v204_v1 }
 0x220   :  { %v198_v4 = vsub.f32 1.5, %v197_v2 }
 0x221   :  { %v216_v5 = vadd.f32 %v279_v0, %v210_v3 }
 0x222   :  { %v199_v6 = vmul.f32 %v285_v58, %v198_v4 }
 0x223   :  { %218 = vst.msk [vmem:[%s395_s7] sm:$0xff] %vm50_vm0, %v216_v5 }
 0x224   :  { %v203_v7 = vsel %vm202_vm7, %v285_v58, %v199_v6 }
 0x225   :  { %v205_v8 = vmul.f32 %v203_v7, %v171_v44 }
 0x227   :  { %v211_v9 = vmul.f32 %v278_v61, %v205_v8 }
 0x229   :  { %v217_v10 = vadd.f32 %v279_v0, %v211_v9 }
 0x22b   :  { %219 = vst.msk [vmem:[%s395_s7 + $0x8] sm:$0xff] %vm50_vm0, %v217_v10 }

// kernel: transformer_fwd.11
= control target key start
LH: loop header
LB: loop body
LE: loop exit
PB: predicated region body
PF: predicated region fallthrough
CT: control target
= control target key end

     0   :  { %s1179_s25 = smov 0   ;;  %s1311_s0 = inlined_call_operand.vmem [shape: f32[2,8,32], index: 0, kind: input, shape index: {}, may-alias: {0,1}]   ;;  %s1312_s1 = inlined_call_operand.vmem [shape: f32[2,8,32], index: 1, kind: input, shape index: {}, may-alias: {0,1}]   ;;  %s1313_s2 = inlined_call_operand.vmem [shape: s8[2,8,8], index: 2, kind: input, shape index: {}]   ;;  %s1314_s3 = inlined_call_operand.vmem [shape: bf16[32,32], index: 3, kind: input, shape index: {}]   ;;  %s1315_s4 = inlined_call_operand.vmem [shape: f32[1,32], index: 4, kind: input, shape index: {}]   ;;  %s1316_s5 = inlined_call_operand.vmem [shape: bf16[32,32], index: 5, kind: input, shape index: {}]   ;;  %s1317_s6 = inlined_call_operand.vmem [shape: f32[1,32], index: 6, kind: input, shape index: {}]   ;;  %s1318_s7 = inlined_call_operand.vmem [shape: bf16[32,32], index: 7, kind: input, shape index: {}]   ;;  %s1319_s8 = inlined_call_operand.vmem [shape: f32[1,32], index: 8, kind: input, shape index: {}]   ;;  %s1320_s9 = inlined_call_operand.vmem [shape: bf16[32,32], index: 9, kind: input, shape index: {}]   ;;  %s1321_s10 = inlined_call_operand.vmem [shape: f32[1,32], index: 10, kind: input, shape index: {}]   ;;  %s1322_s11 = inlined_call_operand.vmem [shape: f32[1,32], index: 11, kind: input, shape index: {}]   ;;  %s1323_s12 = inlined_call_operand.vmem [shape: f32[1,32], index: 12, kind: input, shape index: {}]   ;;  %s1324_s13 = inlined_call_operand.vmem [shape: f32[2,8,32], index: 13, kind: output, shape index: {}]  }
   0x1 LB: > { %s990_s26 = sadd.s32 4294967295, %s1100_s25   ;;  %p994_p0 = scmp.ge.s32.totalorder %s1100_s25, 1  ;;  %s1100_s25 = sphi %s1179_s25, %s23_s25  }
   0x2   : > { %p404_p1 = scmp.lt.s32.totalorder %s1100_s25, 3 }
   0x4   : > { %p405_p2 = pnand %p994_p0, %p404_p1 }
   0x5   : > { %p454_p3 = scmp.lt.s32.totalorder (!%p405_p2), %s990_s26, 1  ;;  %s1102_s14 = smov (!%p405_p2), 112  }
   0x6   : > { %408 = sbr.rel (%p405_p2) target bundleno = 1349 (0x545), region = 72  ;;  %s1103_s15 = smov (!%p405_p2), 120  }
   0x7   : > { %s1104_s16 = smov (!%p405_p2), 104   ;;  %s1105_s29 = smov (!%p405_p2), 8  }
   0x8   : > { %s1106_s30 = smov (!%p405_p2), 24  }
   0xb   : > { %v1046_v0 = vld [vmem:[%s1314_s3 + $0x8] sm:$0xff]  ;;  %v1045_v2 = vld [vmem:[%s1314_s3] sm:$0xff]  ;;  %s1328_s26 = smov (!%p454_p3, %s990_s26), 1  ;;  %vm497_vm0 = vcmask 261120   ;;  %vm586_vm1 = vcmask 64512   ;;  %vm624_vm3 = vcmask 1043456  }
   0xc   : > { %v1048_v1 = vld [vmem:[%s1316_s5 + $0x8] sm:$0xff]  ;;  %507 = vmatpush.bf16.msra.mxu0 %v1046_v0  ;;  %v1047_v3 = vld [vmem:[%s1316_s5] sm:$0xff]  ;;  %s1202_s18 = sshll.u32 %s1328_s26, 3  ;;  %s997_s17 = sshll.u32 %s1328_s26, 1  ;;  %vm831_vm4 = vcmask 130048   ;;  %vm833_vm5 = vcmask 195584  }
   0xd   : > { %543 = vmatpush.bf16.msra.mxu1 %v1048_v1  ;;  %s457_s21 = scalar_lea.vmem %s1311_s0, %s1202_s18  ;;  %s461_s24 = scalar_lea.vmem %s1312_s1, %s1202_s18  ;;  %v1068_v8 = vld [vmem:[%s1315_s4] ss:$0 sm:$0xff]  ;;  %v1050_v36 = vld [vmem:[%s1318_s7 + $0x8] sm:$0xff] }
   0xe   : > { %v1208_v4 = vld [vmem:[%s457_s21] sm:$0xff]  ;;  %s465_s21 = scalar_lea.vmem %s1313_s2, %s997_s17  ;;  %576 = vmatpush.bf16.msra.mxu2 %v1050_v36 }
   0xf   : > { %v475_v5 = vpack.c.bf16 %v1208_v4, %v1208_v4  ;;  %v472_v6 = vld [vmem:[%s461_s24] sm:$0xff] }
  0x10   : > { %508 = vmatpush.bf16.msra.mxu0 %v1045_v2  ;;  %v476_v7 = vpack.c.bf16 %v472_v6, %v472_v6  ;;  %v1069_v9 = vld [vmem:[%s1317_s6] ss:$0 sm:$0xff] }
  0x11   : > { %544 = vmatpush.bf16.msra.mxu1 %v1047_v3  ;;  %v473_v27 = vld [vmem:[%s465_s21] sm:$0x3] }
  0x12   : > { %v474_v28 = vunpack.c.0.s8 %v473_v27  ;;  %v1049_v37 = vld [vmem:[%s1318_s7] sm:$0xff] }
  0x13   : > { %1007 = vmatmul.msk.bf16.vlgmr.msra.gmra.mxu0 %vm497_vm0, %v475_v5  ;;  %577 = vmatpush.bf16.msra.mxu2 %v1049_v37  ;;  %v1070_v58 = vld [vmem:[%s1319_s8] ss:$0 sm:$0xff] }
  0x14   : > { %1016 = vmatmul.msk.bf16.vlgmr.msra.gmra.mxu1 %vm497_vm0, %v476_v7  ;;  %vm1241_vm2 = vcmp.eq.s32.totalorder %v474_v28, 0 }
  0x16   : > { %1025 = vmatmul.msk.bf16.vlgmr.msra.gmra.mxu2 %vm497_vm0, %v476_v7 }
  0x90   : > { %v510_v10 = vpop.f32.mrf.mxu0 }
  0x91   : > { %v511_v11 = vadd.f32 %v1068_v8, %v510_v10  ;;  %v546_v12 = vpop.f32.mrf.mxu1 }
  0x92   : > { %v547_v13 = vadd.f32 %v1069_v9, %v546_v12 }
  0x93   : > { %v583_v14 = vpack.c.bf16 %v511_v11, %v511_v11 }
  0x94   : > { %v584_v15 = vpack.c.bf16 %v547_v13, %v547_v13 }
  0x95   : > { %702 = vrot.lane.b32.xlu2 %v583_v14, %s1102_s14 }
  0x96   : > { %704 = vrot.lane.b32.xlu1 %v584_v15, %s1102_s14  ;;  %645 = vrot.lane.b32.xlu0 %v584_v15, %s1103_s15  ;;  %v591_v16 = vsel %vm586_vm1, %v584_v15, 0 }
  0x97   : > { %600 = vmatpush.bf16.xpose.msra.mxu3 %v591_v16 }
  0x98   : > { %v512_v17 = vpop.f32.mrf.mxu0 }
  0x99   : > { %v548_v18 = vpop.f32.mrf.mxu1  ;;  %v579_v59 = vpop.f32.mrf.mxu2 }
  0x9a   : > { %v580_v60 = vadd.f32 %v1070_v58, %v579_v59 }
  0x9c   : > { %v585_v61 = vpack.c.bf16 %v580_v60, %v580_v60 }
  0x9d   : > { %760 = vrot.lane.b32.xlu2 %v583_v14, %s1104_s16 }
  0x9e   : > { %762 = vrot.lane.b32.xlu1 %v584_v15, %s1104_s16  ;;  %642 = vrot.lane.b32.xlu0 %v583_v14, %s1103_s15  ;;  %v626_v62 = vsel %vm624_vm3, %v585_v61, 0 }
  0x9f   : > { %1026 = vmatmul.msk.bf16.vlgmr.msra.gmra.mxu3 %vm586_vm1, %v583_v14  ;;  %635 = vmatpush.bf16.msrb.mxu0 %v626_v62 }
  0xa1   : > { %v581_v0 = vpop.f32.mrf.mxu2 }
  0xef   : > { %v703_v23 = vpop.permute.xlu2 %702 }
  0xf7   : > { %v761_v29 = vpop.permute.xlu2 %760 }
 0x108   : > { %v705_v19 = vpop.permute.xlu1 %704  ;;  %v646_v20 = vpop.permute.xlu0 %645 }
 0x109   : > { %v651_v21 = vsel %vm586_vm1, %v646_v20, 0  ;;  %v710_v22 = vsel %vm586_vm1, %v705_v19, 0 }
 0x10a   : > { %660 = vmatpush.bf16.xpose.msrb.mxu1 %v651_v21  ;;  %719 = vmatpush.bf16.xpose.msrb.mxu3 %v710_v22 }
 0x110   : > { %v763_v24 = vpop.permute.xlu1 %762  ;;  %v643_v25 = vpop.permute.xlu0 %642 }
 0x111   : > { %v768_v26 = vsel %vm586_vm1, %v763_v24, 0  ;;  %1028 = vmatmul.msk.bf16.vlgmr.msrb.gmra.mxu1 %vm586_vm1, %v643_v25  ;;  %1030 = vmatmul.msk.bf16.vlgmr.msrb.gmra.mxu3 %vm586_vm1, %v703_v23 }
 0x112   : > { %777 = vmatpush.bf16.xpose.msra.mxu1 %v768_v26 }
 0x121   : > { %1032 = vmatmul.msk.bf16.vlgmr.msra.gmra.mxu1 %vm586_vm1, %v761_v29 }
 0x122   : > { %v602_v31 = vpop.f32.mrf.mxu3 }
 0x123   : > { %v607_v32 = vsel %vm1241_vm2, -1e+20, %v602_v31 }
 0x124   : > { %v608_v33 = vmul.f32 0.17677669, %v607_v32 }
 0x126   : > { %v609_v34 = vsel %vm586_vm1, %v608_v33, -inf }
 0x127   : > { %610 = vmax.xlane.f32.xlu1 %v609_v34 }
 0x12a   : > { %v604_v35 = vpop.f32.mrf.mxu3 }
 0x18e   : > { %v662_v38 = vpop.f32.mrf.mxu1 }
 0x18f   : > { %v666_v39 = vsel %vm1241_vm2, -1e+20, %v662_v38 }
 0x190   : > { %v667_v40 = vmul.f32 0.17677669, %v666_v39 }
 0x192   : > { %v668_v41 = vsel %vm586_vm1, %v667_v40, -inf }
 0x193   : > { %669 = vmax.xlane.f32.xlu0 %v668_v41 }
 0x194   : > { %v721_v42 = vpop.f32.mrf.mxu3 }
 0x195   : > { %v725_v52 = vsel %vm1241_vm2, -1e+20, %v721_v42 }
 0x196   : > { %v664_v43 = vpop.f32.mrf.mxu1  ;;  %v726_v54 = vmul.f32 0.17677669, %v725_v52 }
 0x198   : > { %v727_v57 = vsel %vm586_vm1, %v726_v54, -inf }
 0x19a   : > { %v611_v44 = vpop.xlane.xlu1 %610 }
 0x19b   : > { %v612_v45 = vsub.f32 %v608_v33, %v611_v44 }
 0x19c   : > { %v723_v46 = vpop.f32.mrf.mxu3 }
 0x19d   : > { %v613_v47 = vmul.f32 1.442695, %v612_v45  ;;  %v1052_v46 = vld [vmem:[%s1320_s9 + $0x8] sm:$0xff] }
 0x19e   : > { %v779_v48 = vpop.f32.mrf.mxu1  ;;  %865 = vmatpush.bf16.msra.mxu3 %v1052_v46 }
 0x19f   : > { %1074 = vpow2.f32 %v613_v47  ;;  %v783_v49 = vsel %vm1241_vm2, -1e+20, %v779_v48  ;;  %v1051_v47 = vld [vmem:[%s1320_s9] sm:$0xff] }
 0x1a0   : > { %v784_v50 = vmul.f32 0.17677669, %v783_v49 }
 0x1a2   : > { %v785_v51 = vsel %vm586_vm1, %v784_v50, -inf  ;;  %866 = vmatpush.bf16.msra.mxu3 %v1051_v47 }
 0x1a3   : > { %786 = vmax.xlane.f32.xlu2 %v785_v51 }
 0x1a5   : > { %v1075_v53 = vpop.eup %1074 }
 0x1a6   : > { %v781_v55 = vpop.f32.mrf.mxu1  ;;  %v615_v56 = vsel %vm586_vm1, %v1075_v53, 0.0 }
 0x1a7   : > { %616 = vadd.xlane.f32.xlu1 %v615_v56  ;;  %v1071_v55 = vld [vmem:[%s1321_s10] ss:$0 sm:$0xff] }
 0x1ab   : > { %728 = vmax.xlane.f32.xlu2 %v727_v57 }
 0x1c3   : > { %681 = vrot.lane.b32.xlu2 %v585_v61, %s1103_s15 }
 0x206   : > { %v670_v63 = vpop.xlane.xlu0 %669 }
 0x207   : > { %v671_v1 = vsub.f32 %v667_v40, %v670_v63 }
 0x209   : > { %v672_v2 = vmul.f32 1.442695, %v671_v1 }
 0x20b   : > { %1076 = vpow2.f32 %v672_v2 }
 0x211   : > { %v1077_v3 = vpop.eup %1076 }
 0x212   : > { %v674_v5 = vsel %vm586_vm1, %v1077_v3, 0.0 }
 0x213   : > { %675 = vadd.xlane.f32.xlu0 %v674_v5 }
 0x216   : > { %v787_v6 = vpop.xlane.xlu2 %786 }
 0x217   : > { %v788_v7 = vsub.f32 %v784_v50, %v787_v6 }
 0x219   : > { %v789_v8 = vmul.f32 1.442695, %v788_v7 }
 0x21a   : > { %v617_v9 = vpop.xlane.xlu1 %616 }
 0x21b   : > { %1078 = vpow2.f32 %v789_v8 }
 0x21c   : > { %1080 = vrcp.f32 %v617_v9 }
 0x21e   : > { %v729_v10 = vpop.xlane.xlu2 %728 }
 0x21f   : > { %v730_v11 = vsub.f32 %v726_v54, %v729_v10 }
 0x221   : > { %v1079_v12 = vpop.eup %1078  ;;  %v731_v13 = vmul.f32 1.442695, %v730_v11 }
 0x222   : > { %v1081_v14 = vpop.eup %1080  ;;  %v791_v15 = vsel %vm586_vm1, %v1079_v12, 0.0 }
 0x223   : > { %v619_v16 = vmul.f32 %v1081_v14, %v1075_v53  ;;  %1082 = vpow2.f32 %v731_v13  ;;  %792 = vadd.xlane.f32.xlu0 %v791_v15 }
 0x225   : > { %v620_v17 = vpack.c.bf16 %v619_v16, %v619_v16 }
 0x226   : > { %v682_v20 = vpop.permute.xlu2 %681 }
 0x227   : > { %1027 = vmatmul.msk.bf16.vlgmr.msrb.gmra.mxu0 %vm586_vm1, %v620_v17  ;;  %v687_v21 = vsel %vm624_vm3, %v682_v20, 0  ;;  %v1073_v20 = vld [vmem:[%s1323_s12] ss:$0 sm:$0xff] }
 0x228   : > { %696 = vmatpush.bf16.msrb.mxu2 %v687_v21 }
 0x229   : > { %v1083_v18 = vpop.eup %1082 }
 0x22a   : > { %v733_v19 = vsel %vm586_vm1, %v1083_v18, 0.0 }
 0x22b   : > { %734 = vadd.xlane.f32.xlu1 %v733_v19 }
 0x237   : > { %797 = vrot.lane.b32.xlu0 %v585_v61, %s1104_s16 }
 0x244   : > { %739 = vrot.lane.b32.xlu1 %v585_v61, %s1102_s14  ;;  %s1107_s14 = smov 16   ;;  %v1108_v61 = vmov 32.0  }
 0x286   : > { %v676_v22 = vpop.xlane.xlu0 %675 }
 0x287   : > { %1084 = vrcp.f32 %v676_v22 }
 0x28d   : > { %v1085_v23 = vpop.eup %1084 }
 0x28e   : > { %v678_v24 = vmul.f32 %v1085_v23, %v1077_v3 }
 0x290   : > { %v679_v25 = vpack.c.bf16 %v678_v24, %v678_v24 }
 0x292   : > { %1029 = vmatmul.msk.bf16.vlgmr.msrb.gmra.mxu2 %vm586_vm1, %v679_v25 }
 0x296   : > { %v793_v26 = vpop.xlane.xlu0 %792 }
 0x297   : > { %1086 = vrcp.f32 %v793_v26 }
 0x29d   : > { %v1087_v28 = vpop.eup %1086 }
 0x29e   : > { %v795_v29 = vmul.f32 %v1087_v28, %v1079_v12  ;;  %v735_v30 = vpop.xlane.xlu1 %734 }
 0x29f   : > { %1088 = vrcp.f32 %v735_v30 }
 0x2a0   : > { %v796_v33 = vpack.c.bf16 %v795_v29, %v795_v29  ;;  %1090 = vrcp.f32 %v1108_v61 }
 0x2a4   : > { %v637_v27 = vpop.f32.mrf.mxu0 }
 0x2a5   : > { %v1089_v35 = vpop.eup %1088 }
 0x2a6   : > { %v737_v36 = vmul.f32 %v1089_v35, %v1083_v18  ;;  %v1091_v62 = vpop.eup %1090  ;;  %v1072_v18 = vld [vmem:[%s1322_s11] ss:$0 sm:$0xff] }
 0x2a7   : > { %v877_v63 = vmul.f32 32.0, %v1091_v62  ;;  %vm881_vm6 = vweird.f32 %v1091_v62 }
 0x2a8   : > { %v738_v39 = vpack.c.bf16 %v737_v36, %v737_v36 }
 0x2a9   : > { %v798_v31 = vpop.permute.xlu0 %797  ;;  %v878_v0 = vsub.f32 1.0, %v877_v63 }
 0x2aa   : > { %v803_v32 = vsel %vm624_vm3, %v798_v31, 0 }
 0x2ab   : > { %812 = vmatpush.bf16.msra.mxu2 %v803_v32  ;;  %v879_v1 = vmul.f32 %v1091_v62, %v878_v0 }
 0x2ac   : > { %v639_v34 = vpop.f32.mrf.mxu0 }
 0x2ad   : > { %v880_v2 = vadd.f32 %v1091_v62, %v879_v1 }
 0x2ae   : > { %1033 = vmatmul.msk.bf16.vlgmr.msra.gmra.mxu2 %vm586_vm1, %v796_v33 }
 0x2af   : > { %v882_v3 = vsel %vm881_vm6, %v1091_v62, %v880_v2 }
 0x2b6   : > { %v740_v37 = vpop.permute.xlu1 %739 }
 0x2b7   : > { %v745_v38 = vsel %vm624_vm3, %v740_v37, 0 }
 0x2b8   : > { %754 = vmatpush.bf16.msra.mxu0 %v745_v38 }
 0x2bb   : > { %1031 = vmatmul.msk.bf16.vlgmr.msra.gmra.mxu0 %vm586_vm1, %v738_v39 }
 0x315   : > { %v698_v40 = vpop.f32.mrf.mxu2 }
 0x316   : > { %819 = vrot.lane.b32.xlu2 %v698_v40, %s1105_s29  ;;  %s469_s29 = scalar_lea.vmem %s1324_s13, %s1202_s18 }
 0x31d   : > { %v700_v41 = vpop.f32.mrf.mxu2 }
 0x331   : > { %v814_v42 = vpop.f32.mrf.mxu2 }
 0x332   : > { %827 = vrot.lane.b32.xlu2 %v814_v42, %s1106_s30 }
 0x338   : > { %v756_v43 = vpop.f32.mrf.mxu0 }
 0x339   : > { %823 = vrot.lane.b32.xlu0 %v756_v43, %s1107_s14  ;;  %v816_v44 = vpop.f32.mrf.mxu2 }
 0x340   : > { %v758_v45 = vpop.f32.mrf.mxu0 }
 0x370   : > { %v820_v48 = vpop.permute.xlu2 %819 }
 0x371   : > { %v830_v49 = vsel %vm586_vm1, %v637_v27, %v820_v48 }
 0x38c   : > { %v828_v51 = vpop.permute.xlu2 %827 }
 0x3ab   : > { %v824_v50 = vpop.permute.xlu0 %823 }
 0x3ac   : > { %v832_v52 = vsel %vm831_vm4, %v830_v49, %v824_v50 }
 0x3ad   : > { %v834_v53 = vsel %vm833_vm5, %v832_v52, %v828_v51 }
 0x3ae   : > { %v835_v54 = vpack.c.bf16 %v834_v53, %v834_v53 }
 0x3b0   : > { %1042 = vmatmul.msk.bf16.vlgmr.msra.gmra.mxu3 %vm497_vm0, %v835_v54 }
 0x433   : > { %v868_v56 = vpop.f32.mrf.mxu3 }
 0x434   : > { %v869_v57 = vadd.f32 %v1071_v55, %v868_v56 }
 0x436   : > { %v872_v58 = vadd.f32 %v869_v57, %v1208_v4 }
 0x438   : > { %v873_v59 = vsel %vm497_vm0, %v872_v58, 0.0 }
 0x439   : > { %874 = vadd.xlane.f32.xlu1 %v873_v59 }
 0x43b   : > { %v870_v60 = vpop.f32.mrf.mxu3 }
 0x4ac   : > { %v875_v5 = vpop.xlane.xlu1 %874 }
 0x4ad   : > { %v883_v6 = vmul.f32 %v882_v3, %v875_v5 }
 0x4af   : > { %v884_v7 = vsub.f32 %v872_v58, %v883_v6 }
 0x4b1   : > { %v885_v8 = vmul.f32 %v884_v7, %v884_v7 }
 0x4b3   : > { %v886_v9 = vsel %vm497_vm0, %v885_v8, 0.0 }
 0x4b4   : > { %887 = vadd.xlane.f32.xlu0 %v886_v9 }
 0x527   : > { %v888_v4 = vpop.xlane.xlu0 %887 }
 0x528   : > { %v889_v10 = vmul.f32 %v888_v4, %v882_v3 }
 0x52a   : > { %v890_v11 = vadd.f32 1e-05, %v889_v10 }
 0x52c   : > { %1092 = vrsqrt.f32 %v890_v11  ;;  %vm897_vm8 = vweird.f32 %v890_v11 }
 0x532   : > { %v1093_v12 = vpop.eup %1092 }
 0x533   : > { %v892_v13 = vmul.f32 %v1093_v12, %v890_v11  ;;  %vm898_vm7 = vweird.f32 %v1093_v12 }
 0x534   : > { %vm899_vm9 = vmor %vm897_vm8, %vm898_vm7 }
 0x535   : > { %v893_v14 = vmul.f32 %v1093_v12, %v892_v13 }
 0x537   : > { %v894_v15 = vmul.f32 0.5, %v893_v14 }
 0x539   : > { %v895_v16 = vsub.f32 1.5, %v894_v15 }
 0x53b   : > { %v896_v17 = vmul.f32 %v1093_v12, %v895_v16 }
 0x53d   : > { %v900_v19 = vsel %vm899_vm9, %v1093_v12, %v896_v17 }
 0x53e   : > { %v901_v21 = vmul.f32 %v900_v19, %v884_v7 }
 0x540   : > { %v906_v22 = vmul.f32 %v1072_v18, %v901_v21 }
 0x542   : > { %v911_v23 = vadd.f32 %v1073_v20, %v906_v22 }
 0x544   : > { %912 = vst.msk [vmem:[%s469_s29] sm:$0xff] %vm497_vm0, %v911_v23 }
 0x545 PF: > { %s23_s25 = sadd.s32 1, %s1100_s25  }
 0x546   : > { %p20_p4 = scmp.ge.s32.totalorder %s23_s25, 4  }
 0x548   :  { %22 = sbr.rel (!%p20_p4) target bundleno = 1 (0x1), region = 108 }

// kernel: transformer_fwd.21
= control target key start
LH: loop header
LB: loop body
LE: loop exit
PB: predicated region body
PF: predicated region fallthrough
CT: control target
= control target key end

     0   :  { %s231_s1 = inlined_call_operand.vmem [shape: bf16[128,128], index: 1, kind: input, shape index: {}]   ;;  %s232_s2 = inlined_call_operand.vmem [shape: f32[1,128], index: 2, kind: input, shape index: {}]   ;;  %s233_s0 = inlined_call_operand.vmem [shape: bf16[16,128], index: 0, kind: input, shape index: {}]   ;;  %s234_s3 = inlined_call_operand.vmem [shape: f32[16,128], index: 3, kind: output, shape index: {}]  }
   0x1   :  { %v173_v0 = vld [vmem:[%s231_s1 + $0x38] sm:$0xff]  ;;  %v172_v1 = vld [vmem:[%s231_s1 + $0x30] sm:$0xff]  ;;  %v171_v2 = vld [vmem:[%s231_s1 + $0x28] sm:$0xff] }
   0x2   :  { %94 = vmatpush.bf16.msra.mxu0 %v173_v0  ;;  %v170_v3 = vld [vmem:[%s231_s1 + $0x20] sm:$0xff]  ;;  %v169_v4 = vld [vmem:[%s231_s1 + $0x18] sm:$0xff]  ;;  %v168_v5 = vld [vmem:[%s231_s1 + $0x10] sm:$0xff] }
   0x3   :  { %v167_v6 = vld [vmem:[%s231_s1 + $0x8] sm:$0xff]  ;;  %v166_v7 = vld [vmem:[%s231_s1] sm:$0xff] }
   0x4   :  { %v165_v8 = vld [vmem:[%s233_s0] sm:$0xff] }
   0x5   :  { %v174_v9 = vld [vmem:[%s232_s2] ss:$0 sm:$0xff] }
   0x6   :  { %95 = vmatpush.bf16.msra.mxu0 %v172_v1 }
   0xa   :  { %96 = vmatpush.bf16.msra.mxu0 %v171_v2 }
   0xe   :  { %97 = vmatpush.bf16.msra.mxu0 %v170_v3 }
  0x12   :  { %98 = vmatpush.bf16.msra.mxu0 %v169_v4 }
  0x16   :  { %99 = vmatpush.bf16.msra.mxu0 %v168_v5 }
  0x1a   :  { %100 = vmatpush.bf16.msra.mxu0 %v167_v6 }
  0x1e   :  { %101 = vmatpush.bf16.msra.mxu0 %v166_v7 }
  0x21   :  { %102 = vmatmul.bf16.vlgmr.msra.gmra.mxu0 %v165_v8 }
  0x9e   :  { %v103_v10 = vpop.f32.mrf.mxu0 }
  0x9f   :  { %v121_v11 = vadd.f32 %v174_v9, %v103_v10 }
  0xa1   :  { %123 = vst [vmem:[%s234_s3] sm:$0xff] %v121_v11 }
  0xa6   :  { %v105_v12 = vpop.f32.mrf.mxu0 }
  0xa7   :  { %v122_v13 = vadd.f32 %v174_v9, %v105_v12 }
  0xa9   :  { %124 = vst [vmem:[%s234_s3 + $0x8] sm:$0xff] %v122_v13 }

</bundles_post_ra>
